<compile_context>
chip_gen: v7x
topology: tpu7x:2x2x1
jax: 0.10.0
libtpu: 0.0.40
codegen_flags: <defaults>
</compile_context>

<pallas_src>
import jax
import jax.numpy as jnp
from jax import lax
from jax.experimental import pallas as pl
from jax.experimental.pallas import tpu as pltpu


def _round_up(a, m):
    return (a + m - 1) // m * m


def make_rnnlm_kernel(num_layers, seq_len, hidden_dim, batch_tile,
                      unroll_threshold=16, loop_unroll=4):
    L, T, H, BT = num_layers, seq_len, hidden_dim, batch_tile

    def kernel(*refs):
        # ---- inputs ----
        x_ref = refs[0]            # (T, BT, E) time-major batch tile, f32
        h0_ref = refs[1]           # (L, BT, H)
        c0_ref = refs[2]           # (L, BT, H)
        idx = 3
        layer_refs = []
        for _ in range(L):
            # (in_dim, 4H), (H, 4H), (1, 4H); columns ordered [i | f | o | g]
            layer_refs.append(tuple(refs[idx:idx + 3]))
            idx += 3
        wout_ref = refs[idx]       # (H, V_pad)  pre-transposed, lane-dense
        bout_ref = refs[idx + 1]   # (1, V_pad)
        # ---- outputs ----
        out_ref = refs[idx + 2]    # (BT, V_pad)
        hn_ref = refs[idx + 3]     # (L, BT, H)
        cn_ref = refs[idx + 4]     # (L, BT, H)
        # ---- scratch ----
        gx_ref = refs[idx + 5]     # (T*BT, 4H) f32: batched input projection
        act_ref = refs[idx + 6]    # (T*BT, H)  f32: inter-layer activations

        E = x_ref.shape[-1]
        # Free leading-dim merge (BT % 8 == 0): row = t*BT + b, time-major.
        cur_flat = x_ref[...].reshape(T * BT, E)

        h = None
        for l in range(L):
            wih_ref, whh_ref, b_ref = layer_refs[l]
            wih = wih_ref[...]
            whh = whh_ref[...]
            b = b_ref[...]                     # (1, 4H), f32

            if l > 0:
                cur_flat = act_ref[...]        # previous layer's outputs

            # Batched input projection for ALL timesteps: one MXU matmul per
            # layer, off the serial recurrence critical path.  Materialized in
            # VMEM scratch so the loop only keeps BT-row slices live.
            gx_ref[...] = jnp.dot(cur_flat.astype(wih.dtype), wih,
                                  preferred_element_type=jnp.float32) + b

            h = h0_ref[l]                      # (BT, H) f32
            c = c0_ref[l]
            last_layer = (l == L - 1)

            def step(t, carry, _whh=whh, _last=last_layer):
                h, c = carry
                off = t * BT
                if not isinstance(off, int):
                    off = pl.multiple_of(off, BT)
                gx = gx_ref[pl.ds(off, BT), :]                      # (BT, 4H)
                gates = gx + jnp.dot(h.astype(_whh.dtype), _whh,
                                     preferred_element_type=jnp.float32)
                # Gate columns are packed (i | f | o | g): one sigmoid pass
                # over 3H lanes, one tanh over H lanes (instead of 4H + 4H).
                sg = jax.nn.sigmoid(gates[:, :3 * H])
                g_g = jnp.tanh(gates[:, 3 * H:4 * H])
                i_g = sg[:, 0 * H:1 * H]
                f_g = sg[:, 1 * H:2 * H]
                o_g = sg[:, 2 * H:3 * H]
                c = f_g * c + i_g * g_g
                h = o_g * jnp.tanh(c)
                if not _last:                  # top layer's per-step outs are dead
                    act_ref[pl.ds(off, BT), :] = h
                return h, c

            if T <= unroll_threshold:
                for t in range(T):             # static unroll (small T)
                    h, c = step(t, (h, c))
            else:
                h, c = lax.fori_loop(0, T, step, (h, c), unroll=loop_unroll)

            hn_ref[l] = h
            cn_ref[l] = c

        # Final linear on the last timestep of the top layer + sigmoid.
        wout = wout_ref[...]
        bout = bout_ref[...]
        logits = jnp.dot(h.astype(wout.dtype), wout,
                         preferred_element_type=jnp.float32) + bout
        out_ref[...] = jax.nn.sigmoid(logits)

    return kernel


def rnnlm_forward(x, h0, c0, params, *, batch_tile=None,
                  weights_dtype=jnp.bfloat16):
    """x: (B, T, E) float32 (batch_first like PyTorch), h0/c0: (L, B, H)."""
    B, T, E = x.shape
    L, _, H = h0.shape
    V = params["w_out"].shape[0]

    if batch_tile is None:
        # 256 rows fills the v6e/v7x MXU (and >= v5e's 128); small B falls
        # back to the sublane-padded batch.  On v7x prefer configurations
        # where the resulting nb is a multiple of 2 so both TCs get work.
        batch_tile = 256
    BT = min(_round_up(B, 8), _round_up(batch_tile, 8))
    B_pad = _round_up(B, BT)
    nb = B_pad // BT
    V_pad = _round_up(V, 128)                  # lane-dense output store
    pad_b = B_pad - B
    wd = weights_dtype

    # Time-major input (single swapaxes + pad), padded batch rows are zeros.
    x_tm = jnp.pad(jnp.swapaxes(x, 0, 1).astype(jnp.float32),
                   ((0, 0), (0, pad_b), (0, 0)))          # (T, B_pad, E)
    h0_p = jnp.pad(h0.astype(jnp.float32), ((0, 0), (0, pad_b), (0, 0)))
    c0_p = jnp.pad(c0.astype(jnp.float32), ((0, 0), (0, pad_b), (0, 0)))

    def reorder_gates(w, axis=0):
        # PyTorch packs (i, f, g, o) along the 4H axis; the kernel wants
        # (i, f, o, g) so sigmoid/tanh each hit one contiguous slab.
        i, f, g, o = jnp.split(w, 4, axis=axis)
        return jnp.concatenate([i, f, o, g], axis=axis)

    inputs = [x_tm, h0_p, c0_p]
    in_specs = [
        pl.BlockSpec((T, BT, E), lambda i: (0, i, 0)),
        pl.BlockSpec((L, BT, H), lambda i: (0, i, 0)),
        pl.BlockSpec((L, BT, H), lambda i: (0, i, 0)),
    ]
    for l in range(L):
        in_dim = E if l == 0 else H
        wih = reorder_gates(params["w_ih"][l]).T.astype(wd)          # (in, 4H)
        whh = reorder_gates(params["w_hh"][l]).T.astype(wd)          # (H, 4H)
        b = reorder_gates(params["b_ih"][l] + params["b_hh"][l]) \
            .reshape(1, 4 * H).astype(jnp.float32)
        inputs += [wih, whh, b]
        in_specs += [
            pl.BlockSpec((in_dim, 4 * H), lambda i: (0, 0)),
            pl.BlockSpec((H, 4 * H), lambda i: (0, 0)),
            pl.BlockSpec((1, 4 * H), lambda i: (0, 0)),
        ]
    w_out_p = jnp.zeros((H, V_pad), wd).at[:, :V].set(params["w_out"].T.astype(wd))
    b_out_p = jnp.zeros((1, V_pad), jnp.float32).at[:, :V].set(
        params["b_out"].reshape(1, V).astype(jnp.float32))
    inputs += [w_out_p, b_out_p]
    in_specs += [
        pl.BlockSpec((H, V_pad), lambda i: (0, 0)),
        pl.BlockSpec((1, V_pad), lambda i: (0, 0)),
    ]

    out_shapes = (
        jax.ShapeDtypeStruct((B_pad, V_pad), jnp.float32),   # sigmoid(linear)
        jax.ShapeDtypeStruct((L, B_pad, H), jnp.float32),    # h_n
        jax.ShapeDtypeStruct((L, B_pad, H), jnp.float32),    # c_n
    )
    out_specs = (
        pl.BlockSpec((BT, V_pad), lambda i: (i, 0)),
        pl.BlockSpec((L, BT, H), lambda i: (0, i, 0)),
        pl.BlockSpec((L, BT, H), lambda i: (0, i, 0)),
    )
    scratch_shapes = [
        pltpu.VMEM((T * BT, 4 * H), jnp.float32),   # batched gates_x
        pltpu.VMEM((T * BT, H), jnp.float32),       # inter-layer activations
    ]

    # Rough VMEM budget estimate -> clamp to [32, 64] MiB (64 MiB is v7x's
    # per-TC physical VMEM; v5e/v6e have headroom above that if ever needed).
    wbytes = jnp.dtype(wd).itemsize
    weight_elems = sum((E if l == 0 else H) * 4 * H + H * 4 * H for l in range(L))
    est = (2 * T * BT * E * 4
           + 2 * 4 * L * BT * H * 4
           + 2 * BT * V_pad * 4
           + 2 * weight_elems * wbytes
           + 2 * L * 4 * H * 4
           + 2 * (H * V_pad * wbytes + V_pad * 4)
           + T * BT * 4 * H * 4 + T * BT * H * 4)
    vmem_limit = int(min(max(2 * est, 32 * 1024 * 1024), 64 * 1024 * 1024))

    kernel = make_rnnlm_kernel(L, T, H, BT)
    out, hn, cn = pl.pallas_call(
        kernel,
        out_shape=out_shapes,
        grid_spec=pltpu.PrefetchScalarGridSpec(
            num_scalar_prefetch=0,
            grid=(nb,),
            in_specs=in_specs,
            out_specs=out_specs,
            scratch_shapes=scratch_shapes),
        compiler_params=pltpu.CompilerParams(
            dimension_semantics=("parallel",),   # batch tiles shard across TCs on v7x
            vmem_limit_bytes=vmem_limit),
    )(*inputs)

    return out[:B, :V], hn[:, :B, :], cn[:, :B, :]


def rnnlm_reference(x, h0, c0, params):
    """Pure-JAX reference (matches torch.nn.LSTM batch_first semantics)."""
    B, T, E = x.shape
    L, _, H = h0.shape
    layer_in = x
    h_list, c_list = [], []
    for l in range(L):
        wih, whh = params["w_ih"][l], params["w_hh"][l]
        b = params["b_ih"][l] + params["b_hh"][l]

        def step(carry, x_t, _wih=wih, _whh=whh, _b=b):
            h, c = carry
            gates = x_t @ _wih.T + h @ _whh.T + _b
            i, f, g, o = jnp.split(gates, 4, axis=-1)
            i = jax.nn.sigmoid(i)
            f = jax.nn.sigmoid(f)
            g = jnp.tanh(g)
            o = jax.nn.sigmoid(o)
            c = f * c + i * g
            h = o * jnp.tanh(c)
            return (h, c), h

        (h, c), outs = lax.scan(step, (h0[l], c0[l]),
                                jnp.transpose(layer_in, (1, 0, 2)))
        layer_in = jnp.transpose(outs, (1, 0, 2))
        h_list.append(h)
        c_list.append(c)

    logits = layer_in[:, -1, :] @ params["w_out"].T + params["b_out"]
    return jax.nn.sigmoid(logits), jnp.stack(h_list), jnp.stack(c_list)


def init_params(key, embedding_dim, hidden_dim, num_layers, num_labels):
    """Deterministic init mimicking PyTorch uniform(-1/sqrt(H), 1/sqrt(H))."""
    H = hidden_dim
    scale = 1.0 / jnp.sqrt(jnp.float32(H))

    def u(k, shape):
        return jax.random.uniform(k, shape, jnp.float32, -scale, scale)

    params = {"w_ih": [], "w_hh": [], "b_ih": [], "b_hh": []}
    for l in range(num_layers):
        in_dim = embedding_dim if l == 0 else H
        key, k1, k2, k3, k4 = jax.random.split(key, 5)
        params["w_ih"].append(u(k1, (4 * H, in_dim)))
        params["w_hh"].append(u(k2, (4 * H, H)))
        params["b_ih"].append(u(k3, (4 * H,)))
        params["b_hh"].append(u(k4, (4 * H,)))
    key, k1, k2 = jax.random.split(key, 3)
    params["w_out"] = u(k1, (num_labels, H))
    params["b_out"] = u(k2, (num_labels,))
    return params


if __name__ == "__main__":
    # Small shapes consistent with the module's forward.
    B, T = 2, 8                # batch, sequence length
    E, H = 32, 32              # embedding_dim, hidden_dim
    L, V = 2, 16               # num_layers, num_labels

    key = jax.random.PRNGKey(0)
    k_p, k_x, k_h, k_c = jax.random.split(key, 4)

    params = init_params(k_p, E, H, L, V)
    x = jax.random.normal(k_x, (B, T, E), jnp.float32)    # "embeds" input
    h0 = jax.random.normal(k_h, (L, B, H), jnp.float32)
    c0 = jax.random.normal(k_c, (L, B, H), jnp.float32)

    ref_out, ref_hn, ref_cn = rnnlm_reference(x, h0, c0, params)

    # f32 weights: tight numerical check against the pure-JAX reference.
    out, h_n, c_n = rnnlm_forward(x, h0, c0, params, weights_dtype=jnp.float32)
    jax.block_until_ready((out, h_n, c_n))
    assert jnp.allclose(out, ref_out, atol=1e-4, rtol=1e-4)
    assert jnp.allclose(h_n, ref_hn, atol=1e-4, rtol=1e-4)
    assert jnp.allclose(c_n, ref_cn, atol=1e-4, rtol=1e-4)

    # bf16 weights (the performance default on all generations): weights are
    # quantized, so compare with a loose tolerance only.
    out_bf, h_bf, c_bf = rnnlm_forward(x, h0, c0, params)
    jax.block_until_ready((out_bf, h_bf, c_bf))
    assert jnp.allclose(out_bf, ref_out, atol=1e-1, rtol=1e-1)
    assert jnp.allclose(h_bf, ref_hn, atol=1e-1, rtol=1e-1)
    assert jnp.allclose(c_bf, ref_cn, atol=1e-1, rtol=1e-1)

    print("KERNEL_OK")
</pallas_src>

<mosaic_0001>
module attributes {stable_mosaic.version = 11 : i64} {
  func.func @kernel(%arg0: i32, %arg1: memref<8x8x32xf32, #tpu.memory_space<vmem>>, %arg2: memref<2x8x32xf32, #tpu.memory_space<vmem>>, %arg3: memref<2x8x32xf32, #tpu.memory_space<vmem>>, %arg4: memref<32x128xf32, #tpu.memory_space<vmem>>, %arg5: memref<32x128xf32, #tpu.memory_space<vmem>>, %arg6: memref<1x128xf32, #tpu.memory_space<vmem>>, %arg7: memref<32x128xf32, #tpu.memory_space<vmem>>, %arg8: memref<32x128xf32, #tpu.memory_space<vmem>>, %arg9: memref<1x128xf32, #tpu.memory_space<vmem>>, %arg10: memref<32x128xf32, #tpu.memory_space<vmem>>, %arg11: memref<1x128xf32, #tpu.memory_space<vmem>>, %arg12: memref<8x128xf32, #tpu.memory_space<vmem>>, %arg13: memref<2x8x32xf32, #tpu.memory_space<vmem>>, %arg14: memref<2x8x32xf32, #tpu.memory_space<vmem>>, %arg15: memref<64x128xf32, #tpu.memory_space<vmem>>, %arg16: memref<64x32xf32, #tpu.memory_space<vmem>>) attributes {dimension_semantics = [#tpu.dimension_semantics<parallel>], iteration_bounds = array<i64: 1>, scalar_prefetch = 0 : i64, scratch_operands = 2 : i64, tpu.core_type = #tpu.core_type<tc>, window_params = [{transform_indices = @transform_0, window_bounds = array<i64: 8, 8, 32>}, {transform_indices = @transform_1, window_bounds = array<i64: 2, 8, 32>}, {transform_indices = @transform_2, window_bounds = array<i64: 2, 8, 32>}, {pipeline_mode = #tpu.pipeline_mode<synchronous>, transform_indices = @transform_3, window_bounds = array<i64: 32, 128>}, {pipeline_mode = #tpu.pipeline_mode<synchronous>, transform_indices = @transform_4, window_bounds = array<i64: 32, 128>}, {pipeline_mode = #tpu.pipeline_mode<synchronous>, transform_indices = @transform_5, window_bounds = array<i64: 1, 128>}, {pipeline_mode = #tpu.pipeline_mode<synchronous>, transform_indices = @transform_6, window_bounds = array<i64: 32, 128>}, {pipeline_mode = #tpu.pipeline_mode<synchronous>, transform_indices = @transform_7, window_bounds = array<i64: 32, 128>}, {pipeline_mode = #tpu.pipeline_mode<synchronous>, transform_indices = @transform_8, window_bounds = array<i64: 1, 128>}, {pipeline_mode = #tpu.pipeline_mode<synchronous>, transform_indices = @transform_9, window_bounds = array<i64: 32, 128>}, {pipeline_mode = #tpu.pipeline_mode<synchronous>, transform_indices = @transform_10, window_bounds = array<i64: 1, 128>}, {transform_indices = @transform_11, window_bounds = array<i64: 8, 128>}, {transform_indices = @transform_12, window_bounds = array<i64: 2, 8, 32>}, {transform_indices = @transform_13, window_bounds = array<i64: 2, 8, 32>}]} {
    %c0 = arith.constant 0 : index
    %c0_0 = arith.constant 0 : index
    %c0_1 = arith.constant 0 : index
    %0 = vector.load %arg1[%c0, %c0_0, %c0_1] : memref<8x8x32xf32, #tpu.memory_space<vmem>>, vector<8x8x32xf32>
    %1 = vector.shape_cast %0 : vector<8x8x32xf32> to vector<64x32xf32>
    %c0_2 = arith.constant 0 : index
    %c0_3 = arith.constant 0 : index
    %2 = vector.load %arg4[%c0_2, %c0_3] : memref<32x128xf32, #tpu.memory_space<vmem>>, vector<32x128xf32>
    %c0_4 = arith.constant 0 : index
    %c0_5 = arith.constant 0 : index
    %3 = vector.load %arg5[%c0_4, %c0_5] : memref<32x128xf32, #tpu.memory_space<vmem>>, vector<32x128xf32>
    %c0_6 = arith.constant 0 : index
    %c0_7 = arith.constant 0 : index
    %4 = vector.load %arg6[%c0_6, %c0_7] : memref<1x128xf32, #tpu.memory_space<vmem>>, vector<1x128xf32>
    %cst = arith.constant dense<0.000000e+00> : vector<64x128xf32>
    %5 = tpu.matmul %1, %2, %cst {dimension_numbers = #tpu.dot_dimension_numbers<[1], [0], [0], [1], [0, 0, 1, 1], [], []>} : vector<64x32xf32>, vector<32x128xf32>, vector<64x128xf32> -> vector<64x128xf32>
    %6 = vector.broadcast %4 : vector<1x128xf32> to vector<64x128xf32>
    %7 = arith.addf %5, %6 : vector<64x128xf32>
    %c0_8 = arith.constant 0 : index
    %c0_9 = arith.constant 0 : index
    %8 = vector.load %arg15[%c0_8, %c0_9] : memref<64x128xf32, #tpu.memory_space<vmem>>, vector<64x128xf32>
    tpu.vector_store %arg15[%c0_8, %c0_9], %7 {strides = array<i32>} : memref<64x128xf32, #tpu.memory_space<vmem>>, vector<64x128xf32>,
    %c0_10 = arith.constant 0 : index
    %c0_11 = arith.constant 0 : index
    %c0_12 = arith.constant 0 : index
    %9 = vector.load %arg2[%c0_10, %c0_11, %c0_12] : memref<2x8x32xf32, #tpu.memory_space<vmem>>, vector<1x8x32xf32>
    %10 = vector.shape_cast %9 : vector<1x8x32xf32> to vector<8x32xf32>
    %c0_13 = arith.constant 0 : index
    %c0_14 = arith.constant 0 : index
    %c0_15 = arith.constant 0 : index
    %11 = vector.load %arg3[%c0_13, %c0_14, %c0_15] : memref<2x8x32xf32, #tpu.memory_space<vmem>>, vector<1x8x32xf32>
    %12 = vector.shape_cast %11 : vector<1x8x32xf32> to vector<8x32xf32>
    %c0_16 = arith.constant 0 : index
    %c0_17 = arith.constant 0 : index
    %13 = vector.load %arg15[%c0_16, %c0_17] : memref<64x128xf32, #tpu.memory_space<vmem>>, vector<8x128xf32>
    %cst_18 = arith.constant dense<0.000000e+00> : vector<8x128xf32>
    %14 = tpu.matmul %10, %3, %cst_18 {dimension_numbers = #tpu.dot_dimension_numbers<[1], [0], [0], [1], [0, 0, 1, 1], [], []>} : vector<8x32xf32>, vector<32x128xf32>, vector<8x128xf32> -> vector<8x128xf32>
    %15 = arith.addf %13, %14 : vector<8x128xf32>
    %16 = vector.extract_strided_slice %15 {offsets = [0, 0], sizes = [8, 96], strides = [1, 1]} : vector<8x128xf32> to vector<8x96xf32>
    %17 = arith.negf %16 : vector<8x96xf32>
    %18 = math.exp %17 : vector<8x96xf32>
    %cst_19 = arith.constant 1.000000e+00 : f32
    %19 = vector.broadcast %cst_19 : f32 to vector<8x96xf32>
    %20 = arith.addf %19, %18 : vector<8x96xf32>
    %21 = arith.divf %19, %20 : vector<8x96xf32>
    %22 = vector.extract_strided_slice %15 {offsets = [0, 96], sizes = [8, 32], strides = [1, 1]} : vector<8x128xf32> to vector<8x32xf32>
    %23 = math.tanh %22 : vector<8x32xf32>
    %24 = vector.extract_strided_slice %21 {offsets = [0, 0], sizes = [8, 32], strides = [1, 1]} : vector<8x96xf32> to vector<8x32xf32>
    %25 = vector.extract_strided_slice %21 {offsets = [0, 32], sizes = [8, 32], strides = [1, 1]} : vector<8x96xf32> to vector<8x32xf32>
    %26 = vector.extract_strided_slice %21 {offsets = [0, 64], sizes = [8, 32], strides = [1, 1]} : vector<8x96xf32> to vector<8x32xf32>
    %27 = arith.mulf %25, %12 : vector<8x32xf32>
    %28 = arith.mulf %24, %23 : vector<8x32xf32>
    %29 = arith.addf %27, %28 : vector<8x32xf32>
    %30 = math.tanh %29 : vector<8x32xf32>
    %31 = arith.mulf %26, %30 : vector<8x32xf32>
    %c0_20 = arith.constant 0 : index
    %c0_21 = arith.constant 0 : index
    %32 = vector.load %arg16[%c0_20, %c0_21] : memref<64x32xf32, #tpu.memory_space<vmem>>, vector<8x32xf32>
    tpu.vector_store %arg16[%c0_20, %c0_21], %31 {strides = array<i32>} : memref<64x32xf32, #tpu.memory_space<vmem>>, vector<8x32xf32>,
    %c8 = arith.constant 8 : index
    %c0_22 = arith.constant 0 : index
    %33 = vector.load %arg15[%c8, %c0_22] : memref<64x128xf32, #tpu.memory_space<vmem>>, vector<8x128xf32>
    %cst_23 = arith.constant dense<0.000000e+00> : vector<8x128xf32>
    %34 = tpu.matmul %31, %3, %cst_23 {dimension_numbers = #tpu.dot_dimension_numbers<[1], [0], [0], [1], [0, 0, 1, 1], [], []>} : vector<8x32xf32>, vector<32x128xf32>, vector<8x128xf32> -> vector<8x128xf32>
    %35 = arith.addf %33, %34 : vector<8x128xf32>
    %36 = vector.extract_strided_slice %35 {offsets = [0, 0], sizes = [8, 96], strides = [1, 1]} : vector<8x128xf32> to vector<8x96xf32>
    %37 = arith.negf %36 : vector<8x96xf32>
    %38 = math.exp %37 : vector<8x96xf32>
    %cst_24 = arith.constant 1.000000e+00 : f32
    %39 = vector.broadcast %cst_24 : f32 to vector<8x96xf32>
    %40 = arith.addf %39, %38 : vector<8x96xf32>
    %41 = arith.divf %39, %40 : vector<8x96xf32>
    %42 = vector.extract_strided_slice %35 {offsets = [0, 96], sizes = [8, 32], strides = [1, 1]} : vector<8x128xf32> to vector<8x32xf32>
    %43 = math.tanh %42 : vector<8x32xf32>
    %44 = vector.extract_strided_slice %41 {offsets = [0, 0], sizes = [8, 32], strides = [1, 1]} : vector<8x96xf32> to vector<8x32xf32>
    %45 = vector.extract_strided_slice %41 {offsets = [0, 32], sizes = [8, 32], strides = [1, 1]} : vector<8x96xf32> to vector<8x32xf32>
    %46 = vector.extract_strided_slice %41 {offsets = [0, 64], sizes = [8, 32], strides = [1, 1]} : vector<8x96xf32> to vector<8x32xf32>
    %47 = arith.mulf %45, %29 : vector<8x32xf32>
    %48 = arith.mulf %44, %43 : vector<8x32xf32>
    %49 = arith.addf %47, %48 : vector<8x32xf32>
    %50 = math.tanh %49 : vector<8x32xf32>
    %51 = arith.mulf %46, %50 : vector<8x32xf32>
    %c8_25 = arith.constant 8 : index
    %c0_26 = arith.constant 0 : index
    %52 = vector.load %arg16[%c8_25, %c0_26] : memref<64x32xf32, #tpu.memory_space<vmem>>, vector<8x32xf32>
    tpu.vector_store %arg16[%c8_25, %c0_26], %51 {strides = array<i32>} : memref<64x32xf32, #tpu.memory_space<vmem>>, vector<8x32xf32>,
    %c16 = arith.constant 16 : index
    %c0_27 = arith.constant 0 : index
    %53 = vector.load %arg15[%c16, %c0_27] : memref<64x128xf32, #tpu.memory_space<vmem>>, vector<8x128xf32>
    %cst_28 = arith.constant dense<0.000000e+00> : vector<8x128xf32>
    %54 = tpu.matmul %51, %3, %cst_28 {dimension_numbers = #tpu.dot_dimension_numbers<[1], [0], [0], [1], [0, 0, 1, 1], [], []>} : vector<8x32xf32>, vector<32x128xf32>, vector<8x128xf32> -> vector<8x128xf32>
    %55 = arith.addf %53, %54 : vector<8x128xf32>
    %56 = vector.extract_strided_slice %55 {offsets = [0, 0], sizes = [8, 96], strides = [1, 1]} : vector<8x128xf32> to vector<8x96xf32>
    %57 = arith.negf %56 : vector<8x96xf32>
    %58 = math.exp %57 : vector<8x96xf32>
    %cst_29 = arith.constant 1.000000e+00 : f32
    %59 = vector.broadcast %cst_29 : f32 to vector<8x96xf32>
    %60 = arith.addf %59, %58 : vector<8x96xf32>
    %61 = arith.divf %59, %60 : vector<8x96xf32>
    %62 = vector.extract_strided_slice %55 {offsets = [0, 96], sizes = [8, 32], strides = [1, 1]} : vector<8x128xf32> to vector<8x32xf32>
    %63 = math.tanh %62 : vector<8x32xf32>
    %64 = vector.extract_strided_slice %61 {offsets = [0, 0], sizes = [8, 32], strides = [1, 1]} : vector<8x96xf32> to vector<8x32xf32>
    %65 = vector.extract_strided_slice %61 {offsets = [0, 32], sizes = [8, 32], strides = [1, 1]} : vector<8x96xf32> to vector<8x32xf32>
    %66 = vector.extract_strided_slice %61 {offsets = [0, 64], sizes = [8, 32], strides = [1, 1]} : vector<8x96xf32> to vector<8x32xf32>
    %67 = arith.mulf %65, %49 : vector<8x32xf32>
    %68 = arith.mulf %64, %63 : vector<8x32xf32>
    %69 = arith.addf %67, %68 : vector<8x32xf32>
    %70 = math.tanh %69 : vector<8x32xf32>
    %71 = arith.mulf %66, %70 : vector<8x32xf32>
    %c16_30 = arith.constant 16 : index
    %c0_31 = arith.constant 0 : index
    %72 = vector.load %arg16[%c16_30, %c0_31] : memref<64x32xf32, #tpu.memory_space<vmem>>, vector<8x32xf32>
    tpu.vector_store %arg16[%c16_30, %c0_31], %71 {strides = array<i32>} : memref<64x32xf32, #tpu.memory_space<vmem>>, vector<8x32xf32>,
    %c24 = arith.constant 24 : index
    %c0_32 = arith.constant 0 : index
    %73 = vector.load %arg15[%c24, %c0_32] : memref<64x128xf32, #tpu.memory_space<vmem>>, vector<8x128xf32>
    %cst_33 = arith.constant dense<0.000000e+00> : vector<8x128xf32>
    %74 = tpu.matmul %71, %3, %cst_33 {dimension_numbers = #tpu.dot_dimension_numbers<[1], [0], [0], [1], [0, 0, 1, 1], [], []>} : vector<8x32xf32>, vector<32x128xf32>, vector<8x128xf32> -> vector<8x128xf32>
    %75 = arith.addf %73, %74 : vector<8x128xf32>
    %76 = vector.extract_strided_slice %75 {offsets = [0, 0], sizes = [8, 96], strides = [1, 1]} : vector<8x128xf32> to vector<8x96xf32>
    %77 = arith.negf %76 : vector<8x96xf32>
    %78 = math.exp %77 : vector<8x96xf32>
    %cst_34 = arith.constant 1.000000e+00 : f32
    %79 = vector.broadcast %cst_34 : f32 to vector<8x96xf32>
    %80 = arith.addf %79, %78 : vector<8x96xf32>
    %81 = arith.divf %79, %80 : vector<8x96xf32>
    %82 = vector.extract_strided_slice %75 {offsets = [0, 96], sizes = [8, 32], strides = [1, 1]} : vector<8x128xf32> to vector<8x32xf32>
    %83 = math.tanh %82 : vector<8x32xf32>
    %84 = vector.extract_strided_slice %81 {offsets = [0, 0], sizes = [8, 32], strides = [1, 1]} : vector<8x96xf32> to vector<8x32xf32>
    %85 = vector.extract_strided_slice %81 {offsets = [0, 32], sizes = [8, 32], strides = [1, 1]} : vector<8x96xf32> to vector<8x32xf32>
    %86 = vector.extract_strided_slice %81 {offsets = [0, 64], sizes = [8, 32], strides = [1, 1]} : vector<8x96xf32> to vector<8x32xf32>
    %87 = arith.mulf %85, %69 : vector<8x32xf32>
    %88 = arith.mulf %84, %83 : vector<8x32xf32>
    %89 = arith.addf %87, %88 : vector<8x32xf32>
    %90 = math.tanh %89 : vector<8x32xf32>
    %91 = arith.mulf %86, %90 : vector<8x32xf32>
    %c24_35 = arith.constant 24 : index
    %c0_36 = arith.constant 0 : index
    %92 = vector.load %arg16[%c24_35, %c0_36] : memref<64x32xf32, #tpu.memory_space<vmem>>, vector<8x32xf32>
    tpu.vector_store %arg16[%c24_35, %c0_36], %91 {strides = array<i32>} : memref<64x32xf32, #tpu.memory_space<vmem>>, vector<8x32xf32>,
    %c32 = arith.constant 32 : index
    %c0_37 = arith.constant 0 : index
    %93 = vector.load %arg15[%c32, %c0_37] : memref<64x128xf32, #tpu.memory_space<vmem>>, vector<8x128xf32>
    %cst_38 = arith.constant dense<0.000000e+00> : vector<8x128xf32>
    %94 = tpu.matmul %91, %3, %cst_38 {dimension_numbers = #tpu.dot_dimension_numbers<[1], [0], [0], [1], [0, 0, 1, 1], [], []>} : vector<8x32xf32>, vector<32x128xf32>, vector<8x128xf32> -> vector<8x128xf32>
    %95 = arith.addf %93, %94 : vector<8x128xf32>
    %96 = vector.extract_strided_slice %95 {offsets = [0, 0], sizes = [8, 96], strides = [1, 1]} : vector<8x128xf32> to vector<8x96xf32>
    %97 = arith.negf %96 : vector<8x96xf32>
    %98 = math.exp %97 : vector<8x96xf32>
    %cst_39 = arith.constant 1.000000e+00 : f32
    %99 = vector.broadcast %cst_39 : f32 to vector<8x96xf32>
    %100 = arith.addf %99, %98 : vector<8x96xf32>
    %101 = arith.divf %99, %100 : vector<8x96xf32>
    %102 = vector.extract_strided_slice %95 {offsets = [0, 96], sizes = [8, 32], strides = [1, 1]} : vector<8x128xf32> to vector<8x32xf32>
    %103 = math.tanh %102 : vector<8x32xf32>
    %104 = vector.extract_strided_slice %101 {offsets = [0, 0], sizes = [8, 32], strides = [1, 1]} : vector<8x96xf32> to vector<8x32xf32>
    %105 = vector.extract_strided_slice %101 {offsets = [0, 32], sizes = [8, 32], strides = [1, 1]} : vector<8x96xf32> to vector<8x32xf32>
    %106 = vector.extract_strided_slice %101 {offsets = [0, 64], sizes = [8, 32], strides = [1, 1]} : vector<8x96xf32> to vector<8x32xf32>
    %107 = arith.mulf %105, %89 : vector<8x32xf32>
    %108 = arith.mulf %104, %103 : vector<8x32xf32>
    %109 = arith.addf %107, %108 : vector<8x32xf32>
    %110 = math.tanh %109 : vector<8x32xf32>
    %111 = arith.mulf %106, %110 : vector<8x32xf32>
    %c32_40 = arith.constant 32 : index
    %c0_41 = arith.constant 0 : index
    %112 = vector.load %arg16[%c32_40, %c0_41] : memref<64x32xf32, #tpu.memory_space<vmem>>, vector<8x32xf32>
    tpu.vector_store %arg16[%c32_40, %c0_41], %111 {strides = array<i32>} : memref<64x32xf32, #tpu.memory_space<vmem>>, vector<8x32xf32>,
    %c40 = arith.constant 40 : index
    %c0_42 = arith.constant 0 : index
    %113 = vector.load %arg15[%c40, %c0_42] : memref<64x128xf32, #tpu.memory_space<vmem>>, vector<8x128xf32>
    %cst_43 = arith.constant dense<0.000000e+00> : vector<8x128xf32>
    %114 = tpu.matmul %111, %3, %cst_43 {dimension_numbers = #tpu.dot_dimension_numbers<[1], [0], [0], [1], [0, 0, 1, 1], [], []>} : vector<8x32xf32>, vector<32x128xf32>, vector<8x128xf32> -> vector<8x128xf32>
    %115 = arith.addf %113, %114 : vector<8x128xf32>
    %116 = vector.extract_strided_slice %115 {offsets = [0, 0], sizes = [8, 96], strides = [1, 1]} : vector<8x128xf32> to vector<8x96xf32>
    %117 = arith.negf %116 : vector<8x96xf32>
    %118 = math.exp %117 : vector<8x96xf32>
    %cst_44 = arith.constant 1.000000e+00 : f32
    %119 = vector.broadcast %cst_44 : f32 to vector<8x96xf32>
    %120 = arith.addf %119, %118 : vector<8x96xf32>
    %121 = arith.divf %119, %120 : vector<8x96xf32>
    %122 = vector.extract_strided_slice %115 {offsets = [0, 96], sizes = [8, 32], strides = [1, 1]} : vector<8x128xf32> to vector<8x32xf32>
    %123 = math.tanh %122 : vector<8x32xf32>
    %124 = vector.extract_strided_slice %121 {offsets = [0, 0], sizes = [8, 32], strides = [1, 1]} : vector<8x96xf32> to vector<8x32xf32>
    %125 = vector.extract_strided_slice %121 {offsets = [0, 32], sizes = [8, 32], strides = [1, 1]} : vector<8x96xf32> to vector<8x32xf32>
    %126 = vector.extract_strided_slice %121 {offsets = [0, 64], sizes = [8, 32], strides = [1, 1]} : vector<8x96xf32> to vector<8x32xf32>
    %127 = arith.mulf %125, %109 : vector<8x32xf32>
    %128 = arith.mulf %124, %123 : vector<8x32xf32>
    %129 = arith.addf %127, %128 : vector<8x32xf32>
    %130 = math.tanh %129 : vector<8x32xf32>
    %131 = arith.mulf %126, %130 : vector<8x32xf32>
    %c40_45 = arith.constant 40 : index
    %c0_46 = arith.constant 0 : index
    %132 = vector.load %arg16[%c40_45, %c0_46] : memref<64x32xf32, #tpu.memory_space<vmem>>, vector<8x32xf32>
    tpu.vector_store %arg16[%c40_45, %c0_46], %131 {strides = array<i32>} : memref<64x32xf32, #tpu.memory_space<vmem>>, vector<8x32xf32>,
    %c48 = arith.constant 48 : index
    %c0_47 = arith.constant 0 : index
    %133 = vector.load %arg15[%c48, %c0_47] : memref<64x128xf32, #tpu.memory_space<vmem>>, vector<8x128xf32>
    %cst_48 = arith.constant dense<0.000000e+00> : vector<8x128xf32>
    %134 = tpu.matmul %131, %3, %cst_48 {dimension_numbers = #tpu.dot_dimension_numbers<[1], [0], [0], [1], [0, 0, 1, 1], [], []>} : vector<8x32xf32>, vector<32x128xf32>, vector<8x128xf32> -> vector<8x128xf32>
    %135 = arith.addf %133, %134 : vector<8x128xf32>
    %136 = vector.extract_strided_slice %135 {offsets = [0, 0], sizes = [8, 96], strides = [1, 1]} : vector<8x128xf32> to vector<8x96xf32>
    %137 = arith.negf %136 : vector<8x96xf32>
    %138 = math.exp %137 : vector<8x96xf32>
    %cst_49 = arith.constant 1.000000e+00 : f32
    %139 = vector.broadcast %cst_49 : f32 to vector<8x96xf32>
    %140 = arith.addf %139, %138 : vector<8x96xf32>
    %141 = arith.divf %139, %140 : vector<8x96xf32>
    %142 = vector.extract_strided_slice %135 {offsets = [0, 96], sizes = [8, 32], strides = [1, 1]} : vector<8x128xf32> to vector<8x32xf32>
    %143 = math.tanh %142 : vector<8x32xf32>
    %144 = vector.extract_strided_slice %141 {offsets = [0, 0], sizes = [8, 32], strides = [1, 1]} : vector<8x96xf32> to vector<8x32xf32>
    %145 = vector.extract_strided_slice %141 {offsets = [0, 32], sizes = [8, 32], strides = [1, 1]} : vector<8x96xf32> to vector<8x32xf32>
    %146 = vector.extract_strided_slice %141 {offsets = [0, 64], sizes = [8, 32], strides = [1, 1]} : vector<8x96xf32> to vector<8x32xf32>
    %147 = arith.mulf %145, %129 : vector<8x32xf32>
    %148 = arith.mulf %144, %143 : vector<8x32xf32>
    %149 = arith.addf %147, %148 : vector<8x32xf32>
    %150 = math.tanh %149 : vector<8x32xf32>
    %151 = arith.mulf %146, %150 : vector<8x32xf32>
    %c48_50 = arith.constant 48 : index
    %c0_51 = arith.constant 0 : index
    %152 = vector.load %arg16[%c48_50, %c0_51] : memref<64x32xf32, #tpu.memory_space<vmem>>, vector<8x32xf32>
    tpu.vector_store %arg16[%c48_50, %c0_51], %151 {strides = array<i32>} : memref<64x32xf32, #tpu.memory_space<vmem>>, vector<8x32xf32>,
    %c56 = arith.constant 56 : index
    %c0_52 = arith.constant 0 : index
    %153 = vector.load %arg15[%c56, %c0_52] : memref<64x128xf32, #tpu.memory_space<vmem>>, vector<8x128xf32>
    %cst_53 = arith.constant dense<0.000000e+00> : vector<8x128xf32>
    %154 = tpu.matmul %151, %3, %cst_53 {dimension_numbers = #tpu.dot_dimension_numbers<[1], [0], [0], [1], [0, 0, 1, 1], [], []>} : vector<8x32xf32>, vector<32x128xf32>, vector<8x128xf32> -> vector<8x128xf32>
    %155 = arith.addf %153, %154 : vector<8x128xf32>
    %156 = vector.extract_strided_slice %155 {offsets = [0, 0], sizes = [8, 96], strides = [1, 1]} : vector<8x128xf32> to vector<8x96xf32>
    %157 = arith.negf %156 : vector<8x96xf32>
    %158 = math.exp %157 : vector<8x96xf32>
    %cst_54 = arith.constant 1.000000e+00 : f32
    %159 = vector.broadcast %cst_54 : f32 to vector<8x96xf32>
    %160 = arith.addf %159, %158 : vector<8x96xf32>
    %161 = arith.divf %159, %160 : vector<8x96xf32>
    %162 = vector.extract_strided_slice %155 {offsets = [0, 96], sizes = [8, 32], strides = [1, 1]} : vector<8x128xf32> to vector<8x32xf32>
    %163 = math.tanh %162 : vector<8x32xf32>
    %164 = vector.extract_strided_slice %161 {offsets = [0, 0], sizes = [8, 32], strides = [1, 1]} : vector<8x96xf32> to vector<8x32xf32>
    %165 = vector.extract_strided_slice %161 {offsets = [0, 32], sizes = [8, 32], strides = [1, 1]} : vector<8x96xf32> to vector<8x32xf32>
    %166 = vector.extract_strided_slice %161 {offsets = [0, 64], sizes = [8, 32], strides = [1, 1]} : vector<8x96xf32> to vector<8x32xf32>
    %167 = arith.mulf %165, %149 : vector<8x32xf32>
    %168 = arith.mulf %164, %163 : vector<8x32xf32>
    %169 = arith.addf %167, %168 : vector<8x32xf32>
    %170 = math.tanh %169 : vector<8x32xf32>
    %171 = arith.mulf %166, %170 : vector<8x32xf32>
    %c56_55 = arith.constant 56 : index
    %c0_56 = arith.constant 0 : index
    %172 = vector.load %arg16[%c56_55, %c0_56] : memref<64x32xf32, #tpu.memory_space<vmem>>, vector<8x32xf32>
    tpu.vector_store %arg16[%c56_55, %c0_56], %171 {strides = array<i32>} : memref<64x32xf32, #tpu.memory_space<vmem>>, vector<8x32xf32>,
    %c0_57 = arith.constant 0 : index
    %c0_58 = arith.constant 0 : index
    %c0_59 = arith.constant 0 : index
    %173 = vector.load %arg13[%c0_57, %c0_58, %c0_59] : memref<2x8x32xf32, #tpu.memory_space<vmem>>, vector<1x8x32xf32>
    %174 = vector.shape_cast %173 : vector<1x8x32xf32> to vector<8x32xf32>
    %175 = vector.shape_cast %171 : vector<8x32xf32> to vector<1x8x32xf32>
    tpu.vector_store %arg13[%c0_57, %c0_58, %c0_59], %175 {strides = array<i32>} : memref<2x8x32xf32, #tpu.memory_space<vmem>>, vector<1x8x32xf32>,
    %c0_60 = arith.constant 0 : index
    %c0_61 = arith.constant 0 : index
    %c0_62 = arith.constant 0 : index
    %176 = vector.load %arg14[%c0_60, %c0_61, %c0_62] : memref<2x8x32xf32, #tpu.memory_space<vmem>>, vector<1x8x32xf32>
    %177 = vector.shape_cast %176 : vector<1x8x32xf32> to vector<8x32xf32>
    %178 = vector.shape_cast %169 : vector<8x32xf32> to vector<1x8x32xf32>
    tpu.vector_store %arg14[%c0_60, %c0_61, %c0_62], %178 {strides = array<i32>} : memref<2x8x32xf32, #tpu.memory_space<vmem>>, vector<1x8x32xf32>,
    %c0_63 = arith.constant 0 : index
    %c0_64 = arith.constant 0 : index
    %179 = vector.load %arg7[%c0_63, %c0_64] : memref<32x128xf32, #tpu.memory_space<vmem>>, vector<32x128xf32>
    %c0_65 = arith.constant 0 : index
    %c0_66 = arith.constant 0 : index
    %180 = vector.load %arg8[%c0_65, %c0_66] : memref<32x128xf32, #tpu.memory_space<vmem>>, vector<32x128xf32>
    %c0_67 = arith.constant 0 : index
    %c0_68 = arith.constant 0 : index
    %181 = vector.load %arg9[%c0_67, %c0_68] : memref<1x128xf32, #tpu.memory_space<vmem>>, vector<1x128xf32>
    %c0_69 = arith.constant 0 : index
    %c0_70 = arith.constant 0 : index
    %182 = vector.load %arg16[%c0_69, %c0_70] : memref<64x32xf32, #tpu.memory_space<vmem>>, vector<64x32xf32>
    %cst_71 = arith.constant dense<0.000000e+00> : vector<64x128xf32>
    %183 = tpu.matmul %182, %179, %cst_71 {dimension_numbers = #tpu.dot_dimension_numbers<[1], [0], [0], [1], [0, 0, 1, 1], [], []>} : vector<64x32xf32>, vector<32x128xf32>, vector<64x128xf32> -> vector<64x128xf32>
    %184 = vector.broadcast %181 : vector<1x128xf32> to vector<64x128xf32>
    %185 = arith.addf %183, %184 : vector<64x128xf32>
    %c0_72 = arith.constant 0 : index
    %c0_73 = arith.constant 0 : index
    %186 = vector.load %arg15[%c0_72, %c0_73] : memref<64x128xf32, #tpu.memory_space<vmem>>, vector<64x128xf32>
    tpu.vector_store %arg15[%c0_72, %c0_73], %185 {strides = array<i32>} : memref<64x128xf32, #tpu.memory_space<vmem>>, vector<64x128xf32>,
    %c1 = arith.constant 1 : index
    %c0_74 = arith.constant 0 : index
    %c0_75 = arith.constant 0 : index
    %187 = vector.load %arg2[%c1, %c0_74, %c0_75] : memref<2x8x32xf32, #tpu.memory_space<vmem>>, vector<1x8x32xf32>
    %188 = vector.shape_cast %187 : vector<1x8x32xf32> to vector<8x32xf32>
    %c1_76 = arith.constant 1 : index
    %c0_77 = arith.constant 0 : index
    %c0_78 = arith.constant 0 : index
    %189 = vector.load %arg3[%c1_76, %c0_77, %c0_78] : memref<2x8x32xf32, #tpu.memory_space<vmem>>, vector<1x8x32xf32>
    %190 = vector.shape_cast %189 : vector<1x8x32xf32> to vector<8x32xf32>
    %c0_79 = arith.constant 0 : index
    %c0_80 = arith.constant 0 : index
    %191 = vector.load %arg15[%c0_79, %c0_80] : memref<64x128xf32, #tpu.memory_space<vmem>>, vector<8x128xf32>
    %cst_81 = arith.constant dense<0.000000e+00> : vector<8x128xf32>
    %192 = tpu.matmul %188, %180, %cst_81 {dimension_numbers = #tpu.dot_dimension_numbers<[1], [0], [0], [1], [0, 0, 1, 1], [], []>} : vector<8x32xf32>, vector<32x128xf32>, vector<8x128xf32> -> vector<8x128xf32>
    %193 = arith.addf %191, %192 : vector<8x128xf32>
    %194 = vector.extract_strided_slice %193 {offsets = [0, 0], sizes = [8, 96], strides = [1, 1]} : vector<8x128xf32> to vector<8x96xf32>
    %195 = arith.negf %194 : vector<8x96xf32>
    %196 = math.exp %195 : vector<8x96xf32>
    %cst_82 = arith.constant 1.000000e+00 : f32
    %197 = vector.broadcast %cst_82 : f32 to vector<8x96xf32>
    %198 = arith.addf %197, %196 : vector<8x96xf32>
    %199 = arith.divf %197, %198 : vector<8x96xf32>
    %200 = vector.extract_strided_slice %193 {offsets = [0, 96], sizes = [8, 32], strides = [1, 1]} : vector<8x128xf32> to vector<8x32xf32>
    %201 = math.tanh %200 : vector<8x32xf32>
    %202 = vector.extract_strided_slice %199 {offsets = [0, 0], sizes = [8, 32], strides = [1, 1]} : vector<8x96xf32> to vector<8x32xf32>
    %203 = vector.extract_strided_slice %199 {offsets = [0, 32], sizes = [8, 32], strides = [1, 1]} : vector<8x96xf32> to vector<8x32xf32>
    %204 = vector.extract_strided_slice %199 {offsets = [0, 64], sizes = [8, 32], strides = [1, 1]} : vector<8x96xf32> to vector<8x32xf32>
    %205 = arith.mulf %203, %190 : vector<8x32xf32>
    %206 = arith.mulf %202, %201 : vector<8x32xf32>
    %207 = arith.addf %205, %206 : vector<8x32xf32>
    %208 = math.tanh %207 : vector<8x32xf32>
    %209 = arith.mulf %204, %208 : vector<8x32xf32>
    %c8_83 = arith.constant 8 : index
    %c0_84 = arith.constant 0 : index
    %210 = vector.load %arg15[%c8_83, %c0_84] : memref<64x128xf32, #tpu.memory_space<vmem>>, vector<8x128xf32>
    %cst_85 = arith.constant dense<0.000000e+00> : vector<8x128xf32>
    %211 = tpu.matmul %209, %180, %cst_85 {dimension_numbers = #tpu.dot_dimension_numbers<[1], [0], [0], [1], [0, 0, 1, 1], [], []>} : vector<8x32xf32>, vector<32x128xf32>, vector<8x128xf32> -> vector<8x128xf32>
    %212 = arith.addf %210, %211 : vector<8x128xf32>
    %213 = vector.extract_strided_slice %212 {offsets = [0, 0], sizes = [8, 96], strides = [1, 1]} : vector<8x128xf32> to vector<8x96xf32>
    %214 = arith.negf %213 : vector<8x96xf32>
    %215 = math.exp %214 : vector<8x96xf32>
    %cst_86 = arith.constant 1.000000e+00 : f32
    %216 = vector.broadcast %cst_86 : f32 to vector<8x96xf32>
    %217 = arith.addf %216, %215 : vector<8x96xf32>
    %218 = arith.divf %216, %217 : vector<8x96xf32>
    %219 = vector.extract_strided_slice %212 {offsets = [0, 96], sizes = [8, 32], strides = [1, 1]} : vector<8x128xf32> to vector<8x32xf32>
    %220 = math.tanh %219 : vector<8x32xf32>
    %221 = vector.extract_strided_slice %218 {offsets = [0, 0], sizes = [8, 32], strides = [1, 1]} : vector<8x96xf32> to vector<8x32xf32>
    %222 = vector.extract_strided_slice %218 {offsets = [0, 32], sizes = [8, 32], strides = [1, 1]} : vector<8x96xf32> to vector<8x32xf32>
    %223 = vector.extract_strided_slice %218 {offsets = [0, 64], sizes = [8, 32], strides = [1, 1]} : vector<8x96xf32> to vector<8x32xf32>
    %224 = arith.mulf %222, %207 : vector<8x32xf32>
    %225 = arith.mulf %221, %220 : vector<8x32xf32>
    %226 = arith.addf %224, %225 : vector<8x32xf32>
    %227 = math.tanh %226 : vector<8x32xf32>
    %228 = arith.mulf %223, %227 : vector<8x32xf32>
    %c16_87 = arith.constant 16 : index
    %c0_88 = arith.constant 0 : index
    %229 = vector.load %arg15[%c16_87, %c0_88] : memref<64x128xf32, #tpu.memory_space<vmem>>, vector<8x128xf32>
    %cst_89 = arith.constant dense<0.000000e+00> : vector<8x128xf32>
    %230 = tpu.matmul %228, %180, %cst_89 {dimension_numbers = #tpu.dot_dimension_numbers<[1], [0], [0], [1], [0, 0, 1, 1], [], []>} : vector<8x32xf32>, vector<32x128xf32>, vector<8x128xf32> -> vector<8x128xf32>
    %231 = arith.addf %229, %230 : vector<8x128xf32>
    %232 = vector.extract_strided_slice %231 {offsets = [0, 0], sizes = [8, 96], strides = [1, 1]} : vector<8x128xf32> to vector<8x96xf32>
    %233 = arith.negf %232 : vector<8x96xf32>
    %234 = math.exp %233 : vector<8x96xf32>
    %cst_90 = arith.constant 1.000000e+00 : f32
    %235 = vector.broadcast %cst_90 : f32 to vector<8x96xf32>
    %236 = arith.addf %235, %234 : vector<8x96xf32>
    %237 = arith.divf %235, %236 : vector<8x96xf32>
    %238 = vector.extract_strided_slice %231 {offsets = [0, 96], sizes = [8, 32], strides = [1, 1]} : vector<8x128xf32> to vector<8x32xf32>
    %239 = math.tanh %238 : vector<8x32xf32>
    %240 = vector.extract_strided_slice %237 {offsets = [0, 0], sizes = [8, 32], strides = [1, 1]} : vector<8x96xf32> to vector<8x32xf32>
    %241 = vector.extract_strided_slice %237 {offsets = [0, 32], sizes = [8, 32], strides = [1, 1]} : vector<8x96xf32> to vector<8x32xf32>
    %242 = vector.extract_strided_slice %237 {offsets = [0, 64], sizes = [8, 32], strides = [1, 1]} : vector<8x96xf32> to vector<8x32xf32>
    %243 = arith.mulf %241, %226 : vector<8x32xf32>
    %244 = arith.mulf %240, %239 : vector<8x32xf32>
    %245 = arith.addf %243, %244 : vector<8x32xf32>
    %246 = math.tanh %245 : vector<8x32xf32>
    %247 = arith.mulf %242, %246 : vector<8x32xf32>
    %c24_91 = arith.constant 24 : index
    %c0_92 = arith.constant 0 : index
    %248 = vector.load %arg15[%c24_91, %c0_92] : memref<64x128xf32, #tpu.memory_space<vmem>>, vector<8x128xf32>
    %cst_93 = arith.constant dense<0.000000e+00> : vector<8x128xf32>
    %249 = tpu.matmul %247, %180, %cst_93 {dimension_numbers = #tpu.dot_dimension_numbers<[1], [0], [0], [1], [0, 0, 1, 1], [], []>} : vector<8x32xf32>, vector<32x128xf32>, vector<8x128xf32> -> vector<8x128xf32>
    %250 = arith.addf %248, %249 : vector<8x128xf32>
    %251 = vector.extract_strided_slice %250 {offsets = [0, 0], sizes = [8, 96], strides = [1, 1]} : vector<8x128xf32> to vector<8x96xf32>
    %252 = arith.negf %251 : vector<8x96xf32>
    %253 = math.exp %252 : vector<8x96xf32>
    %cst_94 = arith.constant 1.000000e+00 : f32
    %254 = vector.broadcast %cst_94 : f32 to vector<8x96xf32>
    %255 = arith.addf %254, %253 : vector<8x96xf32>
    %256 = arith.divf %254, %255 : vector<8x96xf32>
    %257 = vector.extract_strided_slice %250 {offsets = [0, 96], sizes = [8, 32], strides = [1, 1]} : vector<8x128xf32> to vector<8x32xf32>
    %258 = math.tanh %257 : vector<8x32xf32>
    %259 = vector.extract_strided_slice %256 {offsets = [0, 0], sizes = [8, 32], strides = [1, 1]} : vector<8x96xf32> to vector<8x32xf32>
    %260 = vector.extract_strided_slice %256 {offsets = [0, 32], sizes = [8, 32], strides = [1, 1]} : vector<8x96xf32> to vector<8x32xf32>
    %261 = vector.extract_strided_slice %256 {offsets = [0, 64], sizes = [8, 32], strides = [1, 1]} : vector<8x96xf32> to vector<8x32xf32>
    %262 = arith.mulf %260, %245 : vector<8x32xf32>
    %263 = arith.mulf %259, %258 : vector<8x32xf32>
    %264 = arith.addf %262, %263 : vector<8x32xf32>
    %265 = math.tanh %264 : vector<8x32xf32>
    %266 = arith.mulf %261, %265 : vector<8x32xf32>
    %c32_95 = arith.constant 32 : index
    %c0_96 = arith.constant 0 : index
    %267 = vector.load %arg15[%c32_95, %c0_96] : memref<64x128xf32, #tpu.memory_space<vmem>>, vector<8x128xf32>
    %cst_97 = arith.constant dense<0.000000e+00> : vector<8x128xf32>
    %268 = tpu.matmul %266, %180, %cst_97 {dimension_numbers = #tpu.dot_dimension_numbers<[1], [0], [0], [1], [0, 0, 1, 1], [], []>} : vector<8x32xf32>, vector<32x128xf32>, vector<8x128xf32> -> vector<8x128xf32>
    %269 = arith.addf %267, %268 : vector<8x128xf32>
    %270 = vector.extract_strided_slice %269 {offsets = [0, 0], sizes = [8, 96], strides = [1, 1]} : vector<8x128xf32> to vector<8x96xf32>
    %271 = arith.negf %270 : vector<8x96xf32>
    %272 = math.exp %271 : vector<8x96xf32>
    %cst_98 = arith.constant 1.000000e+00 : f32
    %273 = vector.broadcast %cst_98 : f32 to vector<8x96xf32>
    %274 = arith.addf %273, %272 : vector<8x96xf32>
    %275 = arith.divf %273, %274 : vector<8x96xf32>
    %276 = vector.extract_strided_slice %269 {offsets = [0, 96], sizes = [8, 32], strides = [1, 1]} : vector<8x128xf32> to vector<8x32xf32>
    %277 = math.tanh %276 : vector<8x32xf32>
    %278 = vector.extract_strided_slice %275 {offsets = [0, 0], sizes = [8, 32], strides = [1, 1]} : vector<8x96xf32> to vector<8x32xf32>
    %279 = vector.extract_strided_slice %275 {offsets = [0, 32], sizes = [8, 32], strides = [1, 1]} : vector<8x96xf32> to vector<8x32xf32>
    %280 = vector.extract_strided_slice %275 {offsets = [0, 64], sizes = [8, 32], strides = [1, 1]} : vector<8x96xf32> to vector<8x32xf32>
    %281 = arith.mulf %279, %264 : vector<8x32xf32>
    %282 = arith.mulf %278, %277 : vector<8x32xf32>
    %283 = arith.addf %281, %282 : vector<8x32xf32>
    %284 = math.tanh %283 : vector<8x32xf32>
    %285 = arith.mulf %280, %284 : vector<8x32xf32>
    %c40_99 = arith.constant 40 : index
    %c0_100 = arith.constant 0 : index
    %286 = vector.load %arg15[%c40_99, %c0_100] : memref<64x128xf32, #tpu.memory_space<vmem>>, vector<8x128xf32>
    %cst_101 = arith.constant dense<0.000000e+00> : vector<8x128xf32>
    %287 = tpu.matmul %285, %180, %cst_101 {dimension_numbers = #tpu.dot_dimension_numbers<[1], [0], [0], [1], [0, 0, 1, 1], [], []>} : vector<8x32xf32>, vector<32x128xf32>, vector<8x128xf32> -> vector<8x128xf32>
    %288 = arith.addf %286, %287 : vector<8x128xf32>
    %289 = vector.extract_strided_slice %288 {offsets = [0, 0], sizes = [8, 96], strides = [1, 1]} : vector<8x128xf32> to vector<8x96xf32>
    %290 = arith.negf %289 : vector<8x96xf32>
    %291 = math.exp %290 : vector<8x96xf32>
    %cst_102 = arith.constant 1.000000e+00 : f32
    %292 = vector.broadcast %cst_102 : f32 to vector<8x96xf32>
    %293 = arith.addf %292, %291 : vector<8x96xf32>
    %294 = arith.divf %292, %293 : vector<8x96xf32>
    %295 = vector.extract_strided_slice %288 {offsets = [0, 96], sizes = [8, 32], strides = [1, 1]} : vector<8x128xf32> to vector<8x32xf32>
    %296 = math.tanh %295 : vector<8x32xf32>
    %297 = vector.extract_strided_slice %294 {offsets = [0, 0], sizes = [8, 32], strides = [1, 1]} : vector<8x96xf32> to vector<8x32xf32>
    %298 = vector.extract_strided_slice %294 {offsets = [0, 32], sizes = [8, 32], strides = [1, 1]} : vector<8x96xf32> to vector<8x32xf32>
    %299 = vector.extract_strided_slice %294 {offsets = [0, 64], sizes = [8, 32], strides = [1, 1]} : vector<8x96xf32> to vector<8x32xf32>
    %300 = arith.mulf %298, %283 : vector<8x32xf32>
    %301 = arith.mulf %297, %296 : vector<8x32xf32>
    %302 = arith.addf %300, %301 : vector<8x32xf32>
    %303 = math.tanh %302 : vector<8x32xf32>
    %304 = arith.mulf %299, %303 : vector<8x32xf32>
    %c48_103 = arith.constant 48 : index
    %c0_104 = arith.constant 0 : index
    %305 = vector.load %arg15[%c48_103, %c0_104] : memref<64x128xf32, #tpu.memory_space<vmem>>, vector<8x128xf32>
    %cst_105 = arith.constant dense<0.000000e+00> : vector<8x128xf32>
    %306 = tpu.matmul %304, %180, %cst_105 {dimension_numbers = #tpu.dot_dimension_numbers<[1], [0], [0], [1], [0, 0, 1, 1], [], []>} : vector<8x32xf32>, vector<32x128xf32>, vector<8x128xf32> -> vector<8x128xf32>
    %307 = arith.addf %305, %306 : vector<8x128xf32>
    %308 = vector.extract_strided_slice %307 {offsets = [0, 0], sizes = [8, 96], strides = [1, 1]} : vector<8x128xf32> to vector<8x96xf32>
    %309 = arith.negf %308 : vector<8x96xf32>
    %310 = math.exp %309 : vector<8x96xf32>
    %cst_106 = arith.constant 1.000000e+00 : f32
    %311 = vector.broadcast %cst_106 : f32 to vector<8x96xf32>
    %312 = arith.addf %311, %310 : vector<8x96xf32>
    %313 = arith.divf %311, %312 : vector<8x96xf32>
    %314 = vector.extract_strided_slice %307 {offsets = [0, 96], sizes = [8, 32], strides = [1, 1]} : vector<8x128xf32> to vector<8x32xf32>
    %315 = math.tanh %314 : vector<8x32xf32>
    %316 = vector.extract_strided_slice %313 {offsets = [0, 0], sizes = [8, 32], strides = [1, 1]} : vector<8x96xf32> to vector<8x32xf32>
    %317 = vector.extract_strided_slice %313 {offsets = [0, 32], sizes = [8, 32], strides = [1, 1]} : vector<8x96xf32> to vector<8x32xf32>
    %318 = vector.extract_strided_slice %313 {offsets = [0, 64], sizes = [8, 32], strides = [1, 1]} : vector<8x96xf32> to vector<8x32xf32>
    %319 = arith.mulf %317, %302 : vector<8x32xf32>
    %320 = arith.mulf %316, %315 : vector<8x32xf32>
    %321 = arith.addf %319, %320 : vector<8x32xf32>
    %322 = math.tanh %321 : vector<8x32xf32>
    %323 = arith.mulf %318, %322 : vector<8x32xf32>
    %c56_107 = arith.constant 56 : index
    %c0_108 = arith.constant 0 : index
    %324 = vector.load %arg15[%c56_107, %c0_108] : memref<64x128xf32, #tpu.memory_space<vmem>>, vector<8x128xf32>
    %cst_109 = arith.constant dense<0.000000e+00> : vector<8x128xf32>
    %325 = tpu.matmul %323, %180, %cst_109 {dimension_numbers = #tpu.dot_dimension_numbers<[1], [0], [0], [1], [0, 0, 1, 1], [], []>} : vector<8x32xf32>, vector<32x128xf32>, vector<8x128xf32> -> vector<8x128xf32>
    %326 = arith.addf %324, %325 : vector<8x128xf32>
    %327 = vector.extract_strided_slice %326 {offsets = [0, 0], sizes = [8, 96], strides = [1, 1]} : vector<8x128xf32> to vector<8x96xf32>
    %328 = arith.negf %327 : vector<8x96xf32>
    %329 = math.exp %328 : vector<8x96xf32>
    %cst_110 = arith.constant 1.000000e+00 : f32
    %330 = vector.broadcast %cst_110 : f32 to vector<8x96xf32>
    %331 = arith.addf %330, %329 : vector<8x96xf32>
    %332 = arith.divf %330, %331 : vector<8x96xf32>
    %333 = vector.extract_strided_slice %326 {offsets = [0, 96], sizes = [8, 32], strides = [1, 1]} : vector<8x128xf32> to vector<8x32xf32>
    %334 = math.tanh %333 : vector<8x32xf32>
    %335 = vector.extract_strided_slice %332 {offsets = [0, 0], sizes = [8, 32], strides = [1, 1]} : vector<8x96xf32> to vector<8x32xf32>
    %336 = vector.extract_strided_slice %332 {offsets = [0, 32], sizes = [8, 32], strides = [1, 1]} : vector<8x96xf32> to vector<8x32xf32>
    %337 = vector.extract_strided_slice %332 {offsets = [0, 64], sizes = [8, 32], strides = [1, 1]} : vector<8x96xf32> to vector<8x32xf32>
    %338 = arith.mulf %336, %321 : vector<8x32xf32>
    %339 = arith.mulf %335, %334 : vector<8x32xf32>
    %340 = arith.addf %338, %339 : vector<8x32xf32>
    %341 = math.tanh %340 : vector<8x32xf32>
    %342 = arith.mulf %337, %341 : vector<8x32xf32>
    %c1_111 = arith.constant 1 : index
    %c0_112 = arith.constant 0 : index
    %c0_113 = arith.constant 0 : index
    %343 = vector.load %arg13[%c1_111, %c0_112, %c0_113] : memref<2x8x32xf32, #tpu.memory_space<vmem>>, vector<1x8x32xf32>
    %344 = vector.shape_cast %343 : vector<1x8x32xf32> to vector<8x32xf32>
    %345 = vector.shape_cast %342 : vector<8x32xf32> to vector<1x8x32xf32>
    tpu.vector_store %arg13[%c1_111, %c0_112, %c0_113], %345 {strides = array<i32>} : memref<2x8x32xf32, #tpu.memory_space<vmem>>, vector<1x8x32xf32>,
    %c1_114 = arith.constant 1 : index
    %c0_115 = arith.constant 0 : index
    %c0_116 = arith.constant 0 : index
    %346 = vector.load %arg14[%c1_114, %c0_115, %c0_116] : memref<2x8x32xf32, #tpu.memory_space<vmem>>, vector<1x8x32xf32>
    %347 = vector.shape_cast %346 : vector<1x8x32xf32> to vector<8x32xf32>
    %348 = vector.shape_cast %340 : vector<8x32xf32> to vector<1x8x32xf32>
    tpu.vector_store %arg14[%c1_114, %c0_115, %c0_116], %348 {strides = array<i32>} : memref<2x8x32xf32, #tpu.memory_space<vmem>>, vector<1x8x32xf32>,
    %c0_117 = arith.constant 0 : index
    %c0_118 = arith.constant 0 : index
    %349 = vector.load %arg10[%c0_117, %c0_118] : memref<32x128xf32, #tpu.memory_space<vmem>>, vector<32x128xf32>
    %c0_119 = arith.constant 0 : index
    %c0_120 = arith.constant 0 : index
    %350 = vector.load %arg11[%c0_119, %c0_120] : memref<1x128xf32, #tpu.memory_space<vmem>>, vector<1x128xf32>
    %cst_121 = arith.constant dense<0.000000e+00> : vector<8x128xf32>
    %351 = tpu.matmul %342, %349, %cst_121 {dimension_numbers = #tpu.dot_dimension_numbers<[1], [0], [0], [1], [0, 0, 1, 1], [], []>} : vector<8x32xf32>, vector<32x128xf32>, vector<8x128xf32> -> vector<8x128xf32>
    %352 = vector.broadcast %350 : vector<1x128xf32> to vector<8x128xf32>
    %353 = arith.addf %351, %352 : vector<8x128xf32>
    %354 = arith.negf %353 : vector<8x128xf32>
    %355 = math.exp %354 : vector<8x128xf32>
    %cst_122 = arith.constant 1.000000e+00 : f32
    %356 = vector.broadcast %cst_122 : f32 to vector<8x128xf32>
    %357 = arith.addf %356, %355 : vector<8x128xf32>
    %358 = arith.divf %356, %357 : vector<8x128xf32>
    %c0_123 = arith.constant 0 : index
    %c0_124 = arith.constant 0 : index
    %359 = vector.load %arg12[%c0_123, %c0_124] : memref<8x128xf32, #tpu.memory_space<vmem>>, vector<8x128xf32>
    tpu.vector_store %arg12[%c0_123, %c0_124], %358 {strides = array<i32>} : memref<8x128xf32, #tpu.memory_space<vmem>>, vector<8x128xf32>,
    return
  }
  func.func @transform_0(%arg0: i32) -> (i32, i32, i32) {
    %c0_i32 = arith.constant 0 : i32
    %c0_i32_0 = arith.constant 0 : i32
    %c0_i32_1 = arith.constant 0 : i32
    return %c0_i32, %arg0, %c0_i32_0 : i32, i32, i32
  }
  func.func @transform_1(%arg0: i32) -> (i32, i32, i32) {
    %c0_i32 = arith.constant 0 : i32
    %c0_i32_0 = arith.constant 0 : i32
    %c0_i32_1 = arith.constant 0 : i32
    return %c0_i32, %arg0, %c0_i32_0 : i32, i32, i32
  }
  func.func @transform_2(%arg0: i32) -> (i32, i32, i32) {
    %c0_i32 = arith.constant 0 : i32
    %c0_i32_0 = arith.constant 0 : i32
    %c0_i32_1 = arith.constant 0 : i32
    return %c0_i32, %arg0, %c0_i32_0 : i32, i32, i32
  }
  func.func @transform_3(%arg0: i32) -> (i32, i32) {
    %c0_i32 = arith.constant 0 : i32
    %c0_i32_0 = arith.constant 0 : i32
    %c0_i32_1 = arith.constant 0 : i32
    return %c0_i32, %c0_i32_0 : i32, i32
  }
  func.func @transform_4(%arg0: i32) -> (i32, i32) {
    %c0_i32 = arith.constant 0 : i32
    %c0_i32_0 = arith.constant 0 : i32
    %c0_i32_1 = arith.constant 0 : i32
    return %c0_i32, %c0_i32_0 : i32, i32
  }
  func.func @transform_5(%arg0: i32) -> (i32, i32) {
    %c0_i32 = arith.constant 0 : i32
    %c0_i32_0 = arith.constant 0 : i32
    %c0_i32_1 = arith.constant 0 : i32
    return %c0_i32, %c0_i32_0 : i32, i32
  }
  func.func @transform_6(%arg0: i32) -> (i32, i32) {
    %c0_i32 = arith.constant 0 : i32
    %c0_i32_0 = arith.constant 0 : i32
    %c0_i32_1 = arith.constant 0 : i32
    return %c0_i32, %c0_i32_0 : i32, i32
  }
  func.func @transform_7(%arg0: i32) -> (i32, i32) {
    %c0_i32 = arith.constant 0 : i32
    %c0_i32_0 = arith.constant 0 : i32
    %c0_i32_1 = arith.constant 0 : i32
    return %c0_i32, %c0_i32_0 : i32, i32
  }
  func.func @transform_8(%arg0: i32) -> (i32, i32) {
    %c0_i32 = arith.constant 0 : i32
    %c0_i32_0 = arith.constant 0 : i32
    %c0_i32_1 = arith.constant 0 : i32
    return %c0_i32, %c0_i32_0 : i32, i32
  }
  func.func @transform_9(%arg0: i32) -> (i32, i32) {
    %c0_i32 = arith.constant 0 : i32
    %c0_i32_0 = arith.constant 0 : i32
    %c0_i32_1 = arith.constant 0 : i32
    return %c0_i32, %c0_i32_0 : i32, i32
  }
  func.func @transform_10(%arg0: i32) -> (i32, i32) {
    %c0_i32 = arith.constant 0 : i32
    %c0_i32_0 = arith.constant 0 : i32
    %c0_i32_1 = arith.constant 0 : i32
    return %c0_i32, %c0_i32_0 : i32, i32
  }
  func.func @transform_11(%arg0: i32) -> (i32, i32) {
    %c0_i32 = arith.constant 0 : i32
    %c0_i32_0 = arith.constant 0 : i32
    return %arg0, %c0_i32 : i32, i32
  }
  func.func @transform_12(%arg0: i32) -> (i32, i32, i32) {
    %c0_i32 = arith.constant 0 : i32
    %c0_i32_0 = arith.constant 0 : i32
    %c0_i32_1 = arith.constant 0 : i32
    return %c0_i32, %arg0, %c0_i32_0 : i32, i32, i32
  }
  func.func @transform_13(%arg0: i32) -> (i32, i32, i32) {
    %c0_i32 = arith.constant 0 : i32
    %c0_i32_0 = arith.constant 0 : i32
    %c0_i32_1 = arith.constant 0 : i32
    return %c0_i32, %arg0, %c0_i32_0 : i32, i32, i32
  }
}

</mosaic_0001>

<bundles_post_ra>
// kernel: tpu_custom_call.1
= control target key start
LH: loop header
LB: loop body
LE: loop exit
PB: predicated region body
PF: predicated region fallthrough
CT: control target
= control target key end

     0   :  { %19 = vsyncpa [#allocation5], 0  ;;  %s3707_s0 = inlined_call_operand.hbm [shape: f32[8,8,32], index: 0, kind: input, shape index: {}]   ;;  %s3708_s1 = inlined_call_operand.hbm [shape: f32[2,8,32], index: 1, kind: input, shape index: {}]   ;;  %s3709_s2 = inlined_call_operand.hbm [shape: f32[2,8,32], index: 2, kind: input, shape index: {}]   ;;  %s3710_s3 = inlined_call_operand.hbm [shape: f32[32,128], index: 3, kind: input, shape index: {}]   ;;  %s3711_s4 = inlined_call_operand.hbm [shape: f32[32,128], index: 4, kind: input, shape index: {}]   ;;  %s3712_s5 = inlined_call_operand.vmem [shape: f32[1,128], index: 5, kind: input, shape index: {}]   ;;  %s3713_s6 = inlined_call_operand.hbm [shape: f32[32,128], index: 6, kind: input, shape index: {}]   ;;  %s3714_s7 = inlined_call_operand.hbm [shape: f32[32,128], index: 7, kind: input, shape index: {}]   ;;  %s3715_s8 = inlined_call_operand.vmem [shape: f32[1,128], index: 8, kind: input, shape index: {}]   ;;  %s3716_s9 = inlined_call_operand.vmem [shape: f32[32,128], index: 9, kind: input, shape index: {}]   ;;  %s3717_s10 = inlined_call_operand.vmem [shape: f32[1,128], index: 10, kind: input, shape index: {}]   ;;  %s3718_s11 = inlined_call_operand.hbm [shape: f32[8,128], index: 11, kind: output, shape index: {0}]   ;;  %s3719_s12 = inlined_call_operand.hbm [shape: f32[2,8,32], index: 12, kind: output, shape index: {1}]   ;;  %s3720_s13 = inlined_call_operand.hbm [shape: f32[2,8,32], index: 13, kind: output, shape index: {2}]  }
   0x1   :  { %20 = vsyncpa [#allocation8], 0 }
   0x2   :  { %21 = vsyncpa [#allocation11], 0 }
   0x3   :  { %22 = vsyncpa [#allocation14], 0 }
   0x4   :  { %23 = vsyncpa [#allocation6], 0 }
   0x5   :  { %24 = vsyncpa [#allocation18], 0  ;;  %s3150_s25 = smov [#allocation7]   ;;  %s3151_s27 = smov [#allocation10]  }
   0x6   :  { %s42_s26 = sshll.u32 %s3150_s25, 4  ;;  %s66_s28 = sshll.u32 %s3151_s27, 4  ;;  %s43_s26 = int_to_ptr.vmem [resolvable:$true] %s42_s26  ;;  %s3238_s28 = int_to_ptr.vmem [resolvable:$true] %s66_s28 }
   0x7   :  { %s2918_s14 = scalar_lea.hbm %s3708_s1, 256 }
   0x8   :  { %p2919_p0 = scmp.ne.s32.totalorder %s3708_s1, %s2918_s14  ;;  %p2922_p1 = scmp.lt.u32.totalorder %s2918_s14, %s3708_s1 }
   0xa   :  { %p2924_p2 = pnand %p2922_p1, %p2919_p0 }
   0xc   :  { %2927 = shalt.err (!%p2924_p2)
}
   0xd   :  { %s2928_s19 = scalar_lea.vmem %s43_s26, 256  ;;  %p2933_p4 = scmp.lt.s32.totalorder %s43_s26, %s43_s26 }
   0xe   :  { %p2929_p3 = scmp.ne.s32.totalorder %s43_s26, %s2928_s19  ;;  %p2934_p5 = scmp.lt.s32.totalorder %s2928_s19, %s2928_s19 }
  0x10   :  { %p2935_p6 = por %p2934_p5, %p2933_p4 }
  0x12   :  { %p2936_p7 = pnand %p2935_p6, %p2929_p3 }
  0x14   :  { %2939 = shalt.err (!%p2936_p7)
}
  0x15   :  { %s3152_s20 = smov 128   ;;  %s3153_s21 = smov 8  }
  0x16   :  { %48 = dma.hbm_to_vmem [thread:$0]  %s3708_s1, 256, %s43_s26, [#allocation8], %s3152_s20, %s3152_s20, %s3153_s21  }
  0x17   :  { %s2940_s27 = scalar_lea.hbm %s3710_s3, 512 }
  0x18   :  { %p2941_p8 = scmp.ne.s32.totalorder %s3710_s3, %s2940_s27  ;;  %p2944_p9 = scmp.lt.u32.totalorder %s2940_s27, %s3710_s3 }
  0x1a   :  { %p2946_p10 = pnand %p2944_p9, %p2941_p8 }
  0x1c   :  { %2949 = shalt.err (!%p2946_p10)
}
  0x1d   :  { %s2950_s16 = scalar_lea.vmem %s3238_s28, 512  ;;  %p2955_p12 = scmp.lt.s32.totalorder %s3238_s28, %s3238_s28 }
  0x1e   :  { %p2951_p11 = scmp.ne.s32.totalorder %s3238_s28, %s2950_s16  ;;  %p2956_p13 = scmp.lt.s32.totalorder %s2950_s16, %s2950_s16 }
  0x20   :  { %p2957_p0 = por %p2956_p13, %p2955_p12 }
  0x22   :  { %p2958_p1 = pnand %p2957_p0, %p2951_p11 }
  0x24   :  { %2961 = shalt.err (!%p2958_p1)
}
  0x25   :  { %72 = dma.hbm_to_vmem [thread:$0]  %s3710_s3, 512, %s3238_s28, [#allocation11], %s3152_s20, %s3152_s20, %s3153_s21  }
  0x26   :  { %s3154_s17 = smov [#allocation13]   ;;  %s3155_s19 = smov [#allocation4]  }
  0x27   :  { %s92_s18 = sshll.u32 %s3154_s17, 4  ;;  %s30_s22 = sshll.u32 %s3155_s19, 4  ;;  %s93_s18 = int_to_ptr.vmem [resolvable:$true] %s92_s18  ;;  %s3275_s22 = int_to_ptr.vmem [resolvable:$true] %s30_s22 }
  0x28   :  { %s2962_s25 = scalar_lea.hbm %s3713_s6, 512 }
  0x29   :  { %p2963_p2 = scmp.ne.s32.totalorder %s3713_s6, %s2962_s25  ;;  %p2966_p3 = scmp.lt.u32.totalorder %s2962_s25, %s3713_s6 }
  0x2b   :  { %p2968_p4 = pnand %p2966_p3, %p2963_p2 }
  0x2d   :  { %2971 = shalt.err (!%p2968_p4)
}
  0x2e   :  { %s2972_s3 = scalar_lea.vmem %s93_s18, 512  ;;  %p2977_p6 = scmp.lt.s32.totalorder %s93_s18, %s93_s18 }
  0x2f   :  { %p2973_p5 = scmp.ne.s32.totalorder %s93_s18, %s2972_s3  ;;  %p2978_p7 = scmp.lt.s32.totalorder %s2972_s3, %s2972_s3 }
  0x31   :  { %p2979_p8 = por %p2978_p7, %p2977_p6 }
  0x33   :  { %p2980_p9 = pnand %p2979_p8, %p2973_p5 }
  0x35   :  { %2983 = shalt.err (!%p2980_p9)
}
  0x36   :  { %98 = dma.hbm_to_vmem [thread:$0]  %s3713_s6, 512, %s93_s18, [#allocation14], %s3152_s20, %s3152_s20, %s3153_s21  }
  0x37   :  { %s2984_s26 = scalar_lea.hbm %s3707_s0, 1024 }
  0x38   :  { %p2985_p10 = scmp.ne.s32.totalorder %s3707_s0, %s2984_s26  ;;  %p2988_p11 = scmp.lt.u32.totalorder %s2984_s26, %s3707_s0 }
  0x3a   :  { %p2990_p12 = pnand %p2988_p11, %p2985_p10 }
  0x3c   :  { %2993 = shalt.err (!%p2990_p12)
}
  0x3d   :  { %s2994_s25 = scalar_lea.vmem %s3275_s22, 1024  ;;  %p2999_p0 = scmp.lt.s32.totalorder %s3275_s22, %s3275_s22 }
  0x3e   :  { %p2995_p13 = scmp.ne.s32.totalorder %s3275_s22, %s2994_s25  ;;  %p3000_p1 = scmp.lt.s32.totalorder %s2994_s25, %s2994_s25 }
  0x40   :  { %p3001_p2 = por %p3000_p1, %p2999_p0 }
  0x42   :  { %p3002_p3 = pnand %p3001_p2, %p2995_p13 }
  0x44   :  { %3005 = shalt.err (!%p3002_p3)
}
  0x45   :  { %36 = dma.hbm_to_vmem [thread:$0]  %s3707_s0, 1024, %s3275_s22, [#allocation5], %s3152_s20, %s3152_s20, %s3153_s21  }
  0x46   :  { %s3156_s27 = smov [#allocation9]   ;;  %s3157_s30 = smov [#allocation12]  }
  0x47   :  { %s54_s29 = sshll.u32 %s3156_s27, 4  ;;  %s78_s14 = sshll.u32 %s3157_s30, 4  ;;  %s55_s29 = int_to_ptr.vmem [resolvable:$true] %s54_s29  ;;  %s3312_s14 = int_to_ptr.vmem [resolvable:$true] %s78_s14 }
  0x48   :  { %s3006_s15 = scalar_lea.hbm %s3709_s2, 256 }
  0x49   :  { %p3007_p4 = scmp.ne.s32.totalorder %s3709_s2, %s3006_s15  ;;  %p3010_p5 = scmp.lt.u32.totalorder %s3006_s15, %s3709_s2 }
  0x4b   :  { %p3012_p6 = pnand %p3010_p5, %p3007_p4 }
  0x4d   :  { %3015 = shalt.err (!%p3012_p6)
}
  0x4e   :  { %s3016_s0 = scalar_lea.vmem %s55_s29, 256  ;;  %p3021_p8 = scmp.lt.s32.totalorder %s55_s29, %s55_s29 }
  0x4f   :  { %p3017_p7 = scmp.ne.s32.totalorder %s55_s29, %s3016_s0  ;;  %p3022_p9 = scmp.lt.s32.totalorder %s3016_s0, %s3016_s0 }
  0x51   :  { %p3023_p10 = por %p3022_p9, %p3021_p8 }
  0x53   :  { %p3024_p11 = pnand %p3023_p10, %p3017_p7 }
  0x55   :  { %3027 = shalt.err (!%p3024_p11)
}
  0x56   :  { %60 = dma.hbm_to_vmem [thread:$0]  %s3709_s2, 256, %s55_s29, [#allocation8], %s3152_s20, %s3152_s20, %s3153_s21  }
  0x57   :  { %s3028_s25 = scalar_lea.hbm %s3711_s4, 512 }
  0x58   :  { %p3029_p12 = scmp.ne.s32.totalorder %s3711_s4, %s3028_s25  ;;  %p3032_p13 = scmp.lt.u32.totalorder %s3028_s25, %s3711_s4 }
  0x5a   :  { %p3034_p0 = pnand %p3032_p13, %p3029_p12 }
  0x5c   :  { %3037 = shalt.err (!%p3034_p0)
}
  0x5d   :  { %s3038_s3 = scalar_lea.vmem %s3312_s14, 512  ;;  %p3043_p2 = scmp.lt.s32.totalorder %s3312_s14, %s3312_s14 }
  0x5e   :  { %p3039_p1 = scmp.ne.s32.totalorder %s3312_s14, %s3038_s3  ;;  %p3044_p3 = scmp.lt.s32.totalorder %s3038_s3, %s3038_s3 }
  0x60   :  { %p3045_p4 = por %p3044_p3, %p3043_p2 }
  0x62   :  { %p3046_p5 = pnand %p3045_p4, %p3039_p1 }
  0x64   :  { %3049 = shalt.err (!%p3046_p5)
}
  0x65   :  { %84 = dma.hbm_to_vmem [thread:$0]  %s3711_s4, 512, %s3312_s14, [#allocation11], %s3152_s20, %s3152_s20, %s3153_s21  }
  0x66   :  { %s3158_s28 = smov [#allocation15]   ;;  %s3050_s26 = scalar_lea.hbm %s3714_s7, 512 }
  0x67   :  { %s104_s15 = sshll.u32 %s3158_s28, 4  ;;  %p3051_p6 = scmp.ne.s32.totalorder %s3714_s7, %s3050_s26  ;;  %s105_s15 = int_to_ptr.vmem [resolvable:$true] %s104_s15 }
  0x68   :  { %p3054_p7 = scmp.lt.u32.totalorder %s3050_s26, %s3714_s7 }
  0x6a   :  { %p3056_p8 = pnand %p3054_p7, %p3051_p6 }
  0x6c   :  { %3059 = shalt.err (!%p3056_p8)
}
  0x6d   :  { %s3060_s23 = scalar_lea.vmem %s105_s15, 512  ;;  %p3065_p10 = scmp.lt.s32.totalorder %s105_s15, %s105_s15 }
  0x6e   :  { %p3061_p9 = scmp.ne.s32.totalorder %s105_s15, %s3060_s23  ;;  %p3066_p11 = scmp.lt.s32.totalorder %s3060_s23, %s3060_s23 }
  0x70   :  { %p3067_p12 = por %p3066_p11, %p3065_p10 }
  0x72   :  { %p3068_p13 = pnand %p3067_p12, %p3061_p9 }
  0x74   :  { %3071 = shalt.err (!%p3068_p13)
}
  0x75   :  { %110 = dma.hbm_to_vmem [thread:$0]  %s3714_s7, 512, %s105_s15, [#allocation14], %s3152_s20, %s3152_s20, %s3153_s21  }
  0x76   :  { %3138 = dma.done.wait [#allocation5], 1024  }
  0x77   :  { %3139 = vsyncadd [#allocation5], 4294966272 }
  0x78   :  { %3140 = dma.done.wait [#allocation8], 512  }
  0x79   :  { %3141 = vsyncadd [#allocation8], 4294966784 }
  0x7a   :  { %3142 = dma.done.wait [#allocation11], 1024  }
  0x7b   :  { %3143 = vsyncadd [#allocation11], 4294966272 }
  0x7c   :  { %3144 = dma.done.wait [#allocation14], 1024  }
  0x7d   :  { %3145 = vsyncadd [#allocation14], 4294966272  ;;  %v3159_v0 = vmov 0.0|0.0   ;;  %vm3160_vm0 = vmmov 0   ;;  %v3161_v1 = vmov 0.0   ;;  %v146_v2 = vld [vmem:[#allocation10] sm:$0xff] }
  0x7e   :  { %2658 = vmatprep.subr.bf16.mxu1 %v3159_v0  ;;  %2451 = vmatprep.mubr.msk.f32.mxu1 %vm3160_vm0, %v3161_v1  ;;  %v147_v3 = vld [vmem:[#allocation10 + $0x8] sm:$0xff]  ;;  %v150_v4 = vld [vmem:[#allocation12] sm:$0xff]  ;;  %vm161_vm1 = vcmask 261120   ;;  %v148_v7 = vld [vmem:[#allocation10 + $0x10] sm:$0xff]  ;;  %s3162_s25 = smov 32   ;;  %s3164_s16 = smov 96  }
  0x7f   :  { %v2650_v5 = vpack.c.bf16 %v147_v3, %v146_v2  ;;  %v151_v6 = vld [vmem:[#allocation12 + $0x8] sm:$0xff]  ;;  %v149_v8 = vld [vmem:[#allocation10 + $0x18] sm:$0xff]  ;;  %v138_v11 = vld [vmem:[#allocation4] sm:$0xff] }
  0x80   :  { %v3367_v9 = vpack.c.bf16 %v151_v6, %v150_v4  ;;  %v2654_v10 = vpack.c.bf16 %v149_v8, %v148_v7  ;;  %v152_v12 = vld [vmem:[#allocation12 + $0x10] sm:$0xff]  ;;  %v153_v13 = vld [vmem:[#allocation12 + $0x18] sm:$0xff]  ;;  %2431 = vmatprep.mubr.msk.f32.mxu0 %vm161_vm1, %v138_v11  ;;  %v139_v15 = vld [vmem:[#allocation4 + $0x8] sm:$0xff] }
  0x81   :  { %2651 = vmatprep.subr.bf16.mxu0 %v2650_v5  ;;  %v3371_v14 = vpack.c.bf16 %v153_v13, %v152_v12  ;;  %v299_v16 = vld [vmem:[#allocation7] sm:$0xff]  ;;  %v300_v25 = vld [vmem:[#allocation9] sm:$0xff]  ;;  %v141_v55 = vld [vmem:[#allocation4 + $0x18] sm:$0xff] }
  0x82   :  { %2653 = vmatpush3.bf16.msra.mxu0 %v2650_v5  ;;  %2660 = vmatpush3.bf16.msra.mxu1 %v3367_v9  ;;  %v3392_v17 = vld [vmem:[%s3712_s5] ss:$0 sm:$0xff]  ;;  %s3163_s5 = smov 64   ;;  %v140_v54 = vld [vmem:[#allocation4 + $0x10] sm:$0xff]  ;;  %v143_v57 = vld [vmem:[#allocation4 + $0x28] sm:$0xff] }
  0x83   :  { %2655 = vmatprep.subr.bf16.mxu0 %v2654_v10  ;;  %2661 = vmatprep.subr.bf16.mxu1 %v3159_v0  ;;  %v142_v56 = vld [vmem:[#allocation4 + $0x20] sm:$0xff]  ;;  %v144_v58 = vld [vmem:[#allocation4 + $0x30] sm:$0xff]  ;;  %v145_v59 = vld [vmem:[#allocation4 + $0x38] sm:$0xff] }
  0x86   :  { %2657 = vmatpush3.bf16.msra.mxu0 %v2654_v10  ;;  %2663 = vmatpush3.bf16.msra.mxu1 %v3371_v14 }
  0x87   :  { %2664 = vmatprep.subr.bf16.mxu1 %v3159_v0  ;;  %2670 = vmatprep.subr.bf16.mxu0 %v3159_v0 }
  0x89   :  { %2432 = vmatmul.mubr.msk.f32.vlgmr.msra.gmra.mrb[0].mxu0 %vm161_vm1, %v139_v15  ;;  %2452 = vmatmul.mubr.msk.f32.vlgmr.msra.gmra.mrb[0].mxu1 %vm161_vm1, %v299_v16 }
  0x8a   :  { %2666 = vmatpush3.bf16.msra.mxu1 %v3367_v9  ;;  %2462 = vmatprep.mubr.msk.f32.mxu1 %vm3160_vm0, %v3161_v1 }
  0x8b   :  { %2667 = vmatprep.subr.bf16.mxu1 %v3159_v0  ;;  %2672 = vmatpush3.bf16.msra.mxu0 %v3367_v9 }
  0x8c   :  { %2673 = vmatprep.subr.bf16.mxu0 %v3159_v0  ;;  %2434 = vmatprep.mubr.msk.f32.mxu0 %vm161_vm1, %v140_v54 }
  0x8d   :  { %2435 = vmatmul.mubr.msk.f32.gmra.mrb[2].mxu0 %vm161_vm1, %v141_v55 }
  0x8e   :  { %2669 = vmatpush3.bf16.msra.mxu1 %v3371_v14  ;;  %2437 = vmatprep.mubr.msk.f32.mxu0 %vm161_vm1, %v142_v56 }
  0x8f   :  { %2675 = vmatpush3.bf16.msra.mxu0 %v3371_v14  ;;  %2676 = vmatprep.subr.bf16.mxu1 %v3159_v0 }
  0x90   :  { %2682 = vmatprep.subr.bf16.mxu0 %v3159_v0 }
  0x91   :  { %2438 = vmatmul.mubr.msk.f32.gmra.mrb[4].mxu0 %vm161_vm1, %v143_v57 }
  0x92   :  { %2440 = vmatprep.mubr.msk.f32.mxu0 %vm161_vm1, %v144_v58 }
  0x95   :  { %2441 = vmatmul.mubr.msk.f32.gmra.mrb[6].mxu0 %vm161_vm1, %v145_v59 }
  0x96   :  { %2473 = vmatprep.mubr.msk.f32.mxu0 %vm3160_vm0, %v3161_v1 }
 0x15c   :  { %v2433_v18 = vpop.f32.mrb[0].mxu0  ;;  %v371_v19 = vpop.f32.mrb[0].mxu1 }
 0x15d   :  { %v252_v20 = vpop.f32.mrb[1].mxu0  ;;  %v2453_v21 = vpop.f32.mrb[1].mxu1  ;;  %v258_v40 = vadd.f32 %v2433_v18, %v3392_v17 }
 0x15e   :  { %v253_v22 = vadd.f32 %v3392_v17, %v252_v20 }
 0x160   :  { %v375_v23 = vadd.f32 %v371_v19, %v253_v22  ;;  %v2436_v63 = vpop.f32.mrb[2].mxu0 }
 0x161   :  { %v262_v2 = vpop.f32.mrb[3].mxu0 }
 0x162   :  { %2786 = vtanh.f32 %v375_v23  ;;  %v2271_v26 = vmul.f32 -1.442695, %v375_v23  ;;  %v263_v8 = vadd.f32 %v3392_v17, %v262_v2 }
 0x164   :  { %2788 = vpow2.f32 %v2271_v26  ;;  %v3421_v3 = vpop.f32.mrb[4].mxu0 }
 0x165   :  { %v3423_v4 = vpop.f32.mrb[5].mxu0 }
 0x168   :  { %v3425_v5 = vpop.f32.mrb[6].mxu0 }
 0x169   :  { %v3427_v6 = vpop.f32.mrb[7].mxu0 }
 0x16c   :  { %v2787_v24 = vpop.eup %2786 }
 0x16d   :  { %389 = vrot.lane.b32.xlu0 %v2787_v24, %s3162_s25 }
 0x16e   :  { %v2789_v27 = vpop.eup %2788 }
 0x16f   :  { %v379_v28 = vadd.f32 1.0, %v2789_v27 }
 0x171   :  { %384 = vrot.lane.b32.xlu0 %v300_v25, %s3162_s25  ;;  %2790 = vrcp.f32 %v379_v28 }
 0x17b   :  { %v2791_v29 = vpop.eup %2790 }
 0x1df   :  { %v390_v30 = vpop.permute.xlu0 %389 }
 0x1e0   :  { %v392_v31 = vmul.f32 %v2791_v29, %v390_v30 }
 0x1e2   :  { %394 = vrot.lane.b32.xlu1 %v392_v31, %s3162_s25 }
 0x1e3   :  { %v385_v32 = vpop.permute.xlu0 %384 }
 0x1e4   :  { %v387_v33 = vmul.f32 %v2791_v29, %v385_v32 }
 0x254   :  { %v395_v34 = vpop.permute.xlu1 %394 }
 0x255   :  { %v397_v35 = vadd.f32 %v395_v34, %v387_v33 }
 0x257   :  { %2792 = vtanh.f32 %v397_v35 }
 0x261   :  { %v2793_v36 = vpop.eup %2792 }
 0x262   :  { %400 = vrot.lane.b32.xlu1 %v2793_v36, %s3162_s25 }
 0x2d4   :  { %v401_v37 = vpop.permute.xlu1 %400 }
 0x2d5   :  { %v403_v38 = vmul.f32 %v2791_v29, %v401_v37  ;;  %v268_v29 = vadd.f32 %v2436_v63, %v3392_v17 }
 0x2d7   :  { %405 = vrot.lane.b32.xlu0 %v403_v38, %s3163_s5 }
 0x349   :  { %v406_v39 = vpop.permute.xlu0 %405 }
 0x34a   :  { %408 = vst.msk [vmem:[#allocation3] sm:$0xff] %vm161_vm1, %v406_v39  ;;  %2463 = vmatmul.mubr.msk.f32.vlgmr.msra.gmra.mrb[2].mxu1 %vm161_vm1, %v406_v39 }
 0x34b   :  { %2678 = vmatpush3.bf16.msra.mxu1 %v3367_v9  ;;  %2484 = vmatprep.mubr.msk.f32.mxu1 %vm3160_vm0, %v3161_v1 }
 0x34c   :  { %2679 = vmatprep.subr.bf16.mxu1 %v3159_v0 }
 0x34f   :  { %2681 = vmatpush3.bf16.msra.mxu1 %v3371_v14 }
 0x350   :  { %2688 = vmatprep.subr.bf16.mxu1 %v3159_v0 }
 0x41d   :  { %v478_v41 = vpop.f32.mrb[2].mxu1 }
 0x41e   :  { %v482_v42 = vadd.f32 %v478_v41, %v258_v40  ;;  %v2464_v43 = vpop.f32.mrb[3].mxu1 }
 0x420   :  { %2794 = vtanh.f32 %v482_v42  ;;  %v2273_v45 = vmul.f32 -1.442695, %v482_v42 }
 0x422   :  { %2796 = vpow2.f32 %v2273_v45 }
 0x42a   :  { %v2795_v44 = vpop.eup %2794 }
 0x42b   :  { %492 = vrot.lane.b32.xlu1 %v2795_v44, %s3162_s25 }
 0x42c   :  { %v2797_v46 = vpop.eup %2796 }
 0x42d   :  { %v486_v47 = vadd.f32 1.0, %v2797_v46 }
 0x42f   :  { %2798 = vrcp.f32 %v486_v47  ;;  %v273_v47 = vadd.f32 %v3392_v17, %v3423_v4  ;;  %v278_v4 = vadd.f32 %v3421_v3, %v3392_v17 }
 0x439   :  { %v2799_v48 = vpop.eup %2798 }
 0x43a   :  { %v490_v51 = vmul.f32 %v2799_v48, %v397_v35 }
 0x49d   :  { %v493_v49 = vpop.permute.xlu1 %492 }
 0x49e   :  { %v495_v50 = vmul.f32 %v2799_v48, %v493_v49 }
 0x4a0   :  { %497 = vrot.lane.b32.xlu0 %v495_v50, %s3162_s25 }
 0x512   :  { %v498_v52 = vpop.permute.xlu0 %497 }
 0x513   :  { %v500_v53 = vadd.f32 %v498_v52, %v490_v51 }
 0x515   :  { %2800 = vtanh.f32 %v500_v53 }
 0x51f   :  { %v2801_v60 = vpop.eup %2800 }
 0x520   :  { %503 = vrot.lane.b32.xlu1 %v2801_v60, %s3162_s25 }
 0x592   :  { %v504_v61 = vpop.permute.xlu1 %503 }
 0x593   :  { %v506_v62 = vmul.f32 %v2799_v48, %v504_v61 }
 0x595   :  { %508 = vrot.lane.b32.xlu0 %v506_v62, %s3163_s5 }
 0x607   :  { %v509_v7 = vpop.permute.xlu0 %508 }
 0x608   :  { %511 = vst.msk [vmem:[#allocation3 + $0x8] sm:$0xff] %vm161_vm1, %v509_v7  ;;  %2474 = vmatmul.mubr.msk.f32.vlgmr.msra.gmra.mrb[8].mxu0 %vm161_vm1, %v509_v7 }
 0x609   :  { %2684 = vmatpush3.bf16.msra.mxu0 %v3367_v9  ;;  %2495 = vmatprep.mubr.msk.f32.mxu0 %vm3160_vm0, %v3161_v1 }
 0x60a   :  { %2685 = vmatprep.subr.bf16.mxu0 %v3159_v0 }
 0x60d   :  { %2687 = vmatpush3.bf16.msra.mxu0 %v3371_v14 }
 0x60e   :  { %2694 = vmatprep.subr.bf16.mxu0 %v3159_v0 }
 0x6db   :  { %v581_v10 = vpop.f32.mrb[8].mxu0 }
 0x6dc   :  { %v585_v11 = vadd.f32 %v581_v10, %v263_v8  ;;  %v2475_v12 = vpop.f32.mrb[9].mxu0 }
 0x6de   :  { %2802 = vtanh.f32 %v585_v11  ;;  %v2275_v15 = vmul.f32 -1.442695, %v585_v11 }
 0x6e0   :  { %2804 = vpow2.f32 %v2275_v15 }
 0x6e8   :  { %v2803_v13 = vpop.eup %2802 }
 0x6e9   :  { %595 = vrot.lane.b32.xlu1 %v2803_v13, %s3162_s25 }
 0x6ea   :  { %v2805_v16 = vpop.eup %2804 }
 0x6eb   :  { %v589_v18 = vadd.f32 1.0, %v2805_v16 }
 0x6ed   :  { %2806 = vrcp.f32 %v589_v18 }
 0x6f7   :  { %v2807_v19 = vpop.eup %2806 }
 0x6f8   :  { %v593_v22 = vmul.f32 %v2807_v19, %v500_v53 }
 0x75b   :  { %v596_v20 = vpop.permute.xlu1 %595 }
 0x75c   :  { %v598_v21 = vmul.f32 %v2807_v19, %v596_v20  ;;  %v1136_v20 = vld [vmem:[#allocation13] sm:$0xff] }
 0x75e   :  { %600 = vrot.lane.b32.xlu0 %v598_v21, %s3162_s25  ;;  %v1137_v21 = vld [vmem:[#allocation13 + $0x8] sm:$0xff] }
 0x7d0   :  { %v601_v23 = vpop.permute.xlu0 %600 }
 0x7d1   :  { %v603_v24 = vadd.f32 %v601_v23, %v593_v22  ;;  %v2706_v22 = vpack.c.bf16 %v1137_v21, %v1136_v20 }
 0x7d3   :  { %2808 = vtanh.f32 %v603_v24 }
 0x7dd   :  { %v2809_v25 = vpop.eup %2808 }
 0x7de   :  { %606 = vrot.lane.b32.xlu1 %v2809_v25, %s3162_s25 }
 0x850   :  { %v607_v26 = vpop.permute.xlu1 %606 }
 0x851   :  { %v609_v27 = vmul.f32 %v2807_v19, %v607_v26  ;;  %v1138_v26 = vld [vmem:[#allocation13 + $0x10] sm:$0xff] }
 0x853   :  { %611 = vrot.lane.b32.xlu0 %v609_v27, %s3163_s5  ;;  %v1139_v27 = vld [vmem:[#allocation13 + $0x18] sm:$0xff] }
 0x8c5   :  { %v612_v28 = vpop.permute.xlu0 %611 }
 0x8c6   :  { %614 = vst.msk [vmem:[#allocation3 + $0x10] sm:$0xff] %vm161_vm1, %v612_v28  ;;  %2485 = vmatmul.mubr.msk.f32.vlgmr.msra.gmra.mrb[4].mxu1 %vm161_vm1, %v612_v28  ;;  %v2710_v28 = vpack.c.bf16 %v1139_v27, %v1138_v26 }
 0x8c7   :  { %2690 = vmatpush3.bf16.msra.mxu1 %v3367_v9  ;;  %2506 = vmatprep.mubr.msk.f32.mxu1 %vm3160_vm0, %v3161_v1 }
 0x8c8   :  { %2691 = vmatprep.subr.bf16.mxu1 %v3159_v0 }
 0x8cb   :  { %2693 = vmatpush3.bf16.msra.mxu1 %v3371_v14 }
 0x8cc   :  { %2700 = vmatprep.subr.bf16.mxu1 %v3159_v0 }
 0x999   :  { %v684_v30 = vpop.f32.mrb[4].mxu1 }
 0x99a   :  { %v688_v31 = vadd.f32 %v684_v30, %v268_v29  ;;  %v2486_v32 = vpop.f32.mrb[5].mxu1  ;;  %v1145_v30 = vld [vmem:[#allocation3] sm:$0xff] }
 0x99b   :  { %v1147_v32 = vld [vmem:[#allocation3 + $0x10] sm:$0xff] }
 0x99c   :  { %2810 = vtanh.f32 %v688_v31  ;;  %v2277_v34 = vmul.f32 -1.442695, %v688_v31  ;;  %v1146_v31 = vld [vmem:[#allocation3 + $0x8] sm:$0xff] }
 0x99e   :  { %2812 = vpow2.f32 %v2277_v34 }
 0x9a6   :  { %v2811_v33 = vpop.eup %2810 }
 0x9a7   :  { %698 = vrot.lane.b32.xlu1 %v2811_v33, %s3162_s25 }
 0x9a8   :  { %v2813_v35 = vpop.eup %2812 }
 0x9a9   :  { %v692_v36 = vadd.f32 1.0, %v2813_v35 }
 0x9ab   :  { %2814 = vrcp.f32 %v692_v36  ;;  %v283_v36 = vadd.f32 %v3392_v17, %v3427_v6 }
 0x9b5   :  { %v2815_v37 = vpop.eup %2814 }
 0x9b6   :  { %v696_v40 = vmul.f32 %v2815_v37, %v603_v24 }
 0xa19   :  { %v699_v38 = vpop.permute.xlu1 %698 }
 0xa1a   :  { %v701_v39 = vmul.f32 %v2815_v37, %v699_v38 }
 0xa1c   :  { %703 = vrot.lane.b32.xlu0 %v701_v39, %s3162_s25 }
 0xa8e   :  { %v704_v41 = vpop.permute.xlu0 %703 }
 0xa8f   :  { %v706_v42 = vadd.f32 %v704_v41, %v696_v40 }
 0xa91   :  { %2816 = vtanh.f32 %v706_v42 }
 0xa9b   :  { %v2817_v43 = vpop.eup %2816 }
 0xa9c   :  { %709 = vrot.lane.b32.xlu1 %v2817_v43, %s3162_s25 }
 0xb0e   :  { %v710_v44 = vpop.permute.xlu1 %709 }
 0xb0f   :  { %v712_v45 = vmul.f32 %v2815_v37, %v710_v44 }
 0xb11   :  { %714 = vrot.lane.b32.xlu0 %v712_v45, %s3163_s5 }
 0xb83   :  { %v715_v46 = vpop.permute.xlu0 %714 }
 0xb84   :  { %717 = vst.msk [vmem:[#allocation3 + $0x18] sm:$0xff] %vm161_vm1, %v715_v46  ;;  %2496 = vmatmul.mubr.msk.f32.vlgmr.msra.gmra.mrb[10].mxu0 %vm161_vm1, %v715_v46 }
 0xb85   :  { %2696 = vmatpush3.bf16.msra.mxu0 %v3367_v9  ;;  %2517 = vmatprep.mubr.msk.f32.mxu0 %vm3160_vm0, %v3161_v1 }
 0xb86   :  { %2697 = vmatprep.subr.bf16.mxu0 %v3159_v0 }
 0xb89   :  { %2699 = vmatpush3.bf16.msra.mxu0 %v3371_v14 }
 0xb8a   :  { %2707 = vmatprep.subr.bf16.mxu0 %v2706_v22 }
 0xb8b   :  { %v1148_v33 = vld [vmem:[#allocation3 + $0x18] sm:$0xff] }
 0xc57   :  { %v787_v48 = vpop.f32.mrb[10].mxu0 }
 0xc58   :  { %v791_v49 = vadd.f32 %v787_v48, %v273_v47  ;;  %v2497_v50 = vpop.f32.mrb[11].mxu0 }
 0xc5a   :  { %2818 = vtanh.f32 %v791_v49  ;;  %v2279_v52 = vmul.f32 -1.442695, %v791_v49 }
 0xc5c   :  { %2820 = vpow2.f32 %v2279_v52 }
 0xc64   :  { %v2819_v51 = vpop.eup %2818 }
 0xc65   :  { %801 = vrot.lane.b32.xlu1 %v2819_v51, %s3162_s25 }
 0xc66   :  { %v2821_v53 = vpop.eup %2820 }
 0xc67   :  { %v795_v54 = vadd.f32 1.0, %v2821_v53 }
 0xc69   :  { %2822 = vrcp.f32 %v795_v54 }
 0xc73   :  { %v2823_v55 = vpop.eup %2822 }
 0xc74   :  { %v799_v58 = vmul.f32 %v2823_v55, %v706_v42 }
 0xcd7   :  { %v802_v56 = vpop.permute.xlu1 %801 }
 0xcd8   :  { %v804_v57 = vmul.f32 %v2823_v55, %v802_v56  ;;  %v1140_v56 = vld [vmem:[#allocation15] sm:$0xff] }
 0xcda   :  { %806 = vrot.lane.b32.xlu0 %v804_v57, %s3162_s25  ;;  %v1141_v57 = vld [vmem:[#allocation15 + $0x8] sm:$0xff] }
 0xd4c   :  { %v807_v59 = vpop.permute.xlu0 %806 }
 0xd4d   :  { %v809_v60 = vadd.f32 %v807_v59, %v799_v58  ;;  %v3509_v58 = vpack.c.bf16 %v1141_v57, %v1140_v56  ;;  %v1142_v59 = vld [vmem:[#allocation15 + $0x10] sm:$0xff] }
 0xd4f   :  { %2824 = vtanh.f32 %v809_v60 }
 0xd59   :  { %v2825_v61 = vpop.eup %2824 }
 0xd5a   :  { %812 = vrot.lane.b32.xlu1 %v2825_v61, %s3162_s25 }
 0xdcc   :  { %v813_v62 = vpop.permute.xlu1 %812 }
 0xdcd   :  { %v815_v63 = vmul.f32 %v2823_v55, %v813_v62 }
 0xdcf   :  { %817 = vrot.lane.b32.xlu0 %v815_v63, %s3163_s5 }
 0xe41   :  { %v818_v2 = vpop.permute.xlu0 %817 }
 0xe42   :  { %820 = vst.msk [vmem:[#allocation3 + $0x20] sm:$0xff] %vm161_vm1, %v818_v2  ;;  %2507 = vmatmul.mubr.msk.f32.vlgmr.msra.gmra.mrb[6].mxu1 %vm161_vm1, %v818_v2  ;;  %v1299_v2 = vld [vmem:[#allocation9 + $0x8] sm:$0xff] }
 0xe43   :  { %2702 = vmatpush3.bf16.msra.mxu1 %v3367_v9  ;;  %2528 = vmatprep.mubr.msk.f32.mxu1 %vm3160_vm0, %v3161_v1 }
 0xe44   :  { %2703 = vmatprep.subr.bf16.mxu1 %v3159_v0 }
 0xe47   :  { %2705 = vmatpush3.bf16.msra.mxu1 %v3371_v14 }
 0xe48   :  { %2714 = vmatprep.subr.bf16.mxu1 %v3159_v0 }
 0xe49   :  { %v1149_v34 = vld [vmem:[#allocation3 + $0x20] sm:$0xff] }
 0xf15   :  { %v890_v7 = vpop.f32.mrb[6].mxu1 }
 0xf16   :  { %v894_v8 = vadd.f32 %v890_v7, %v278_v4  ;;  %v2508_v10 = vpop.f32.mrb[7].mxu1  ;;  %v1297_v7 = vld [vmem:[#allocation7 + $0x8] sm:$0xff] }
 0xf17   :  { %v288_v10 = vadd.f32 %v3425_v5, %v3392_v17 }
 0xf18   :  { %2826 = vtanh.f32 %v894_v8  ;;  %v2281_v9 = vmul.f32 -1.442695, %v894_v8 }
 0xf1a   :  { %2828 = vpow2.f32 %v2281_v9 }
 0xf22   :  { %v2827_v11 = vpop.eup %2826 }
 0xf23   :  { %904 = vrot.lane.b32.xlu1 %v2827_v11, %s3162_s25 }
 0xf24   :  { %v2829_v12 = vpop.eup %2828 }
 0xf25   :  { %v898_v13 = vadd.f32 1.0, %v2829_v12 }
 0xf27   :  { %2830 = vrcp.f32 %v898_v13  ;;  %v3540_v13 = vld [vmem:[%s3715_s8] ss:$0 sm:$0xff] }
 0xf31   :  { %v2831_v15 = vpop.eup %2830 }
 0xf32   :  { %v902_v18 = vmul.f32 %v2831_v15, %v809_v60  ;;  %v1143_v60 = vld [vmem:[#allocation15 + $0x18] sm:$0xff] }
 0xf33   :  { %v3513_v61 = vpack.c.bf16 %v1143_v60, %v1142_v59 }
 0xf95   :  { %v905_v16 = vpop.permute.xlu1 %904 }
 0xf96   :  { %v907_v14 = vmul.f32 %v2831_v15, %v905_v16 }
 0xf98   :  { %909 = vrot.lane.b32.xlu0 %v907_v14, %s3162_s25 }
0x100a   :  { %v910_v19 = vpop.permute.xlu0 %909 }
0x100b   :  { %v912_v3 = vadd.f32 %v910_v19, %v902_v18 }
0x100d   :  { %2832 = vtanh.f32 %v912_v3 }
0x1017   :  { %v2833_v23 = vpop.eup %2832 }
0x1018   :  { %915 = vrot.lane.b32.xlu1 %v2833_v23, %s3162_s25 }
0x108a   :  { %v916_v24 = vpop.permute.xlu1 %915 }
0x108b   :  { %v918_v25 = vmul.f32 %v2831_v15, %v916_v24 }
0x108d   :  { %920 = vrot.lane.b32.xlu0 %v918_v25, %s3163_s5 }
0x10ff   :  { %v921_v29 = vpop.permute.xlu0 %920 }
0x1100   :  { %923 = vst.msk [vmem:[#allocation3 + $0x28] sm:$0xff] %vm161_vm1, %v921_v29  ;;  %2518 = vmatmul.mubr.msk.f32.vlgmr.msra.gmra.mrb[12].mxu0 %vm161_vm1, %v921_v29 }
0x1101   :  { %2709 = vmatpush3.bf16.msra.mxu0 %v2706_v22  ;;  %2539 = vmatprep.mubr.msk.f32.mxu0 %vm161_vm1, %v1145_v30 }
0x1102   :  { %2711 = vmatprep.subr.bf16.mxu0 %v2710_v28 }
0x1105   :  { %2713 = vmatpush3.bf16.msra.mxu0 %v2710_v28 }
0x1106   :  { %2726 = vmatprep.subr.bf16.mxu0 %v3159_v0 }
0x1107   :  { %v1150_v35 = vld [vmem:[#allocation3 + $0x28] sm:$0xff] }
0x1108   :  { %2540 = vmatmul.mubr.msk.f32.vlgmr.msra.gmra.mrb[14].mxu0 %vm161_vm1, %v1146_v31 }
0x1109   :  { %2542 = vmatprep.mubr.msk.f32.mxu0 %vm161_vm1, %v1147_v32  ;;  %2728 = vmatpush3.bf16.msra.mxu0 %v3509_v58 }
0x110a   :  { %2729 = vmatprep.subr.bf16.mxu0 %v3159_v0 }
0x110c   :  { %2543 = vmatmul.mubr.msk.f32.gmra.mrb[16].mxu0 %vm161_vm1, %v1148_v33 }
0x110d   :  { %2545 = vmatprep.mubr.msk.f32.mxu0 %vm161_vm1, %v1149_v34  ;;  %2731 = vmatpush3.bf16.msra.mxu0 %v3513_v61 }
0x110e   :  { %2738 = vmatprep.subr.bf16.mxu0 %v3159_v0 }
0x1110   :  { %2546 = vmatmul.mubr.msk.f32.gmra.mrb[18].mxu0 %vm161_vm1, %v1150_v35 }
0x11d3   :  { %v993_v37 = vpop.f32.mrb[12].mxu0 }
0x11d4   :  { %v997_v38 = vadd.f32 %v993_v37, %v283_v36  ;;  %v2519_v39 = vpop.f32.mrb[13].mxu0 }
0x11d6   :  { %2834 = vtanh.f32 %v997_v38  ;;  %v2283_v47 = vmul.f32 -1.442695, %v997_v38 }
0x11d8   :  { %2836 = vpow2.f32 %v2283_v47 }
0x11db   :  { %v3493_v40 = vpop.f32.mrb[14].mxu0 }
0x11dc   :  { %v1249_v41 = vpop.f32.mrb[15].mxu0 }
0x11dd   :  { %v1250_v15 = vadd.f32 %v3540_v13, %v1249_v41 }
0x11df   :  { %v3495_v42 = vpop.f32.mrb[16].mxu0 }
0x11e0   :  { %v2835_v43 = vpop.eup %2834  ;;  %v3497_v44 = vpop.f32.mrb[17].mxu0 }
0x11e1   :  { %1007 = vrot.lane.b32.xlu1 %v2835_v43, %s3162_s25 }
0x11e2   :  { %v2837_v6 = vpop.eup %2836 }
0x11e3   :  { %v3500_v45 = vpop.f32.mrb[18].mxu0  ;;  %v1001_v48 = vadd.f32 1.0, %v2837_v6 }
0x11e4   :  { %v3502_v46 = vpop.f32.mrb[19].mxu0 }
0x11e5   :  { %2838 = vrcp.f32 %v1001_v48  ;;  %v1255_v48 = vadd.f32 %v3493_v40, %v3540_v13 }
0x11ef   :  { %v2839_v49 = vpop.eup %2838 }
0x11f0   :  { %v1005_v52 = vmul.f32 %v2839_v49, %v912_v3 }
0x1253   :  { %v1008_v50 = vpop.permute.xlu1 %1007 }
0x1254   :  { %v1010_v51 = vmul.f32 %v2839_v49, %v1008_v50 }
0x1256   :  { %1012 = vrot.lane.b32.xlu0 %v1010_v51, %s3162_s25 }
0x12c8   :  { %v1013_v53 = vpop.permute.xlu0 %1012 }
0x12c9   :  { %v3505_v54 = vadd.f32 %v1013_v53, %v1005_v52 }
0x12cb   :  { %2840 = vtanh.f32 %v3505_v54 }
0x12d5   :  { %v2841_v55 = vpop.eup %2840 }
0x12d6   :  { %1018 = vrot.lane.b32.xlu1 %v2841_v55, %s3162_s25 }
0x1348   :  { %v1019_v62 = vpop.permute.xlu1 %1018 }
0x1349   :  { %v1021_v63 = vmul.f32 %v2839_v49, %v1019_v62 }
0x134b   :  { %1023 = vrot.lane.b32.xlu0 %v1021_v63, %s3163_s5 }
0x134f   :  { %1383 = vrot.lane.b32.xlu0 %v1299_v2, %s3162_s25 }
0x13bd   :  { %v1024_v4 = vpop.permute.xlu0 %1023 }
0x13be   :  { %1026 = vst.msk [vmem:[#allocation3 + $0x30] sm:$0xff] %vm161_vm1, %v1024_v4  ;;  %2529 = vmatmul.mubr.msk.f32.vlgmr.msra.gmra.mrb[8].mxu1 %vm161_vm1, %v1024_v4 }
0x13bf   :  { %2716 = vmatpush3.bf16.msra.mxu1 %v3509_v58  ;;  %2559 = vmatprep.mubr.msk.f32.mxu1 %vm3160_vm0, %v3161_v1 }
0x13c0   :  { %2717 = vmatprep.subr.bf16.mxu1 %v3159_v0 }
0x13c1   :  { %v1384_v23 = vpop.permute.xlu0 %1383 }
0x13c3   :  { %2719 = vmatpush3.bf16.msra.mxu1 %v3513_v61 }
0x13c4   :  { %2720 = vmatprep.subr.bf16.mxu1 %v3159_v0 }
0x13c5   :  { %v1151_v8 = vld [vmem:[#allocation3 + $0x30] sm:$0xff] }
0x13c6   :  { %2560 = vmatmul.mubr.msk.f32.vlgmr.msra.gmra.mrb[10].mxu1 %vm161_vm1, %v1297_v7  ;;  %2548 = vmatprep.mubr.msk.f32.mxu0 %vm161_vm1, %v1151_v8 }
0x13c7   :  { %2722 = vmatpush3.bf16.msra.mxu1 %v3509_v58  ;;  %2570 = vmatprep.mubr.msk.f32.mxu1 %vm3160_vm0, %v3161_v1 }
0x13c8   :  { %2723 = vmatprep.subr.bf16.mxu1 %v3159_v0 }
0x13cb   :  { %2725 = vmatpush3.bf16.msra.mxu1 %v3513_v61 }
0x13cc   :  { %2732 = vmatprep.subr.bf16.mxu1 %v3159_v0 }
0x1491   :  { %v1096_v11 = vpop.f32.mrb[8].mxu1 }
0x1492   :  { %v1100_v9 = vadd.f32 %v1096_v11, %v288_v10  ;;  %v2530_v12 = vpop.f32.mrb[9].mxu1 }
0x1493   :  { %v1260_v12 = vadd.f32 %v3540_v13, %v3497_v44 }
0x1494   :  { %v2285_v29 = vmul.f32 -1.442695, %v1100_v9 }
0x1499   :  { %v1370_v16 = vpop.f32.mrb[10].mxu1 }
0x149a   :  { %v1374_v14 = vadd.f32 %v1370_v16, %v1250_v15  ;;  %v2561_v18 = vpop.f32.mrb[11].mxu1 }
0x149c   :  { %2842 = vtanh.f32 %v1374_v14  ;;  %v2296_v3 = vmul.f32 -1.442695, %v1374_v14 }
0x149e   :  { %2844 = vpow2.f32 %v2296_v3 }
0x14a6   :  { %v2843_v19 = vpop.eup %2842 }
0x14a7   :  { %1388 = vrot.lane.b32.xlu1 %v2843_v19, %s3162_s25 }
0x14a8   :  { %v2845_v17 = vpop.eup %2844 }
0x14a9   :  { %v1378_v5 = vadd.f32 1.0, %v2845_v17 }
0x14ab   :  { %2846 = vrcp.f32 %v1378_v5 }
0x14b5   :  { %v2847_v20 = vpop.eup %2846 }
0x14b6   :  { %v1386_v24 = vmul.f32 %v2847_v20, %v1384_v23 }
0x1519   :  { %v1389_v21 = vpop.permute.xlu1 %1388 }
0x151a   :  { %v1391_v22 = vmul.f32 %v2847_v20, %v1389_v21 }
0x151c   :  { %1393 = vrot.lane.b32.xlu1 %v1391_v22, %s3162_s25 }
0x158e   :  { %v1394_v25 = vpop.permute.xlu1 %1393 }
0x158f   :  { %v1396_v26 = vadd.f32 %v1394_v25, %v1386_v24 }
0x1591   :  { %2848 = vtanh.f32 %v1396_v26 }
0x1592   :  { %2850 = vtanh.f32 %v1100_v9 }
0x1593   :  { %2852 = vpow2.f32 %v2285_v29 }
0x159b   :  { %v2849_v27 = vpop.eup %2848 }
0x159c   :  { %1399 = vrot.lane.b32.xlu0 %v2849_v27, %s3162_s25  ;;  %v2851_v28 = vpop.eup %2850 }
0x159d   :  { %v2853_v30 = vpop.eup %2852 }
0x159e   :  { %v1104_v31 = vadd.f32 1.0, %v2853_v30 }
0x15a0   :  { %1110 = vrot.lane.b32.xlu0 %v2851_v28, %s3162_s25  ;;  %2854 = vrcp.f32 %v1104_v31  ;;  %v1265_v28 = vadd.f32 %v3495_v42, %v3540_v13 }
0x15aa   :  { %v2855_v34 = vpop.eup %2854 }
0x15ab   :  { %v1108_v38 = vmul.f32 %v2855_v34, %v3505_v54 }
0x160e   :  { %v1400_v32 = vpop.permute.xlu0 %1399 }
0x160f   :  { %v1402_v33 = vmul.f32 %v2847_v20, %v1400_v32 }
0x1611   :  { %1405 = vrot.lane.b32.xlu1 %v1402_v33, %s3163_s5 }
0x1612   :  { %v1111_v35 = vpop.permute.xlu0 %1110 }
0x1613   :  { %v1113_v36 = vmul.f32 %v2855_v34, %v1111_v35 }
0x1615   :  { %1115 = vrot.lane.b32.xlu0 %v1113_v36, %s3162_s25 }
0x1683   :  { %v1406_v37 = vpop.permute.xlu1 %1405 }
0x1684   :  { %2571 = vmatmul.mubr.msk.f32.vlgmr.msra.gmra.mrb[12].mxu1 %vm161_vm1, %v1406_v37 }
0x1685   :  { %2734 = vmatpush3.bf16.msra.mxu1 %v3509_v58  ;;  %2592 = vmatprep.mubr.msk.f32.mxu1 %vm3160_vm0, %v3161_v1 }
0x1686   :  { %2735 = vmatprep.subr.bf16.mxu1 %v3159_v0 }
0x1687   :  { %v1116_v39 = vpop.permute.xlu0 %1115 }
0x1688   :  { %v3555_v41 = vadd.f32 %v1116_v39, %v1108_v38 }
0x1689   :  { %2737 = vmatpush3.bf16.msra.mxu1 %v3513_v61 }
0x168a   :  { %2856 = vtanh.f32 %v3555_v41  ;;  %2744 = vmatprep.subr.bf16.mxu1 %v3159_v0 }
0x1694   :  { %v2857_v43 = vpop.eup %2856 }
0x1695   :  { %1121 = vrot.lane.b32.xlu0 %v2857_v43, %s3162_s25 }
0x1707   :  { %v1122_v47 = vpop.permute.xlu0 %1121 }
0x1708   :  { %v1124_v6 = vmul.f32 %v2855_v34, %v1122_v47 }
0x170a   :  { %1126 = vrot.lane.b32.xlu0 %v1124_v6, %s3163_s5 }
0x1757   :  { %v1475_v49 = vpop.f32.mrb[12].mxu1 }
0x1758   :  { %v1479_v50 = vadd.f32 %v1475_v49, %v1255_v48  ;;  %v2572_v51 = vpop.f32.mrb[13].mxu1 }
0x175a   :  { %2858 = vtanh.f32 %v1479_v50  ;;  %v2298_v55 = vmul.f32 -1.442695, %v1479_v50  ;;  %v1270_v50 = vadd.f32 %v3540_v13, %v3502_v46 }
0x175c   :  { %2860 = vpow2.f32 %v2298_v55 }
0x1764   :  { %v2859_v52 = vpop.eup %2858 }
0x1765   :  { %1489 = vrot.lane.b32.xlu1 %v2859_v52, %s3162_s25 }
0x1766   :  { %v2861_v40 = vpop.eup %2860 }
0x1767   :  { %v1483_v56 = vadd.f32 1.0, %v2861_v40 }
0x1769   :  { %2862 = vrcp.f32 %v1483_v56 }
0x1773   :  { %v2863_v57 = vpop.eup %2862 }
0x1774   :  { %v1487_v62 = vmul.f32 %v2863_v57, %v1396_v26 }
0x177c   :  { %v1127_v53 = vpop.permute.xlu0 %1126 }
0x177d   :  { %1129 = vst.msk [vmem:[#allocation3 + $0x38] sm:$0xff] %vm161_vm1, %v1127_v53  ;;  %1130 = vst.msk [vmem:[#allocation17] sm:$0xff] %vm161_vm1, %v1127_v53 }
0x1784   :  { %v1152_v54 = vld [vmem:[#allocation3 + $0x38] sm:$0xff] }
0x1785   :  { %2549 = vmatmul.mubr.msk.f32.gmra.mrb[20].mxu0 %vm161_vm1, %v1152_v54 }
0x1786   :  { %2581 = vmatprep.mubr.msk.f32.mxu0 %vm3160_vm0, %v3161_v1 }
0x17d7   :  { %v1490_v59 = vpop.permute.xlu1 %1489 }
0x17d8   :  { %v1492_v60 = vmul.f32 %v2863_v57, %v1490_v59 }
0x17da   :  { %1494 = vrot.lane.b32.xlu1 %v1492_v60, %s3162_s25 }
0x184c   :  { %v1495_v63 = vpop.permute.xlu1 %1494 }
0x184d   :  { %v1497_v2 = vadd.f32 %v1495_v63, %v1487_v62 }
0x184f   :  { %2864 = vtanh.f32 %v1497_v2 }
0x1858   :  { %v3571_v4 = vpop.f32.mrb[20].mxu0 }
0x1859   :  { %v2865_v7 = vpop.eup %2864  ;;  %v3573_v8 = vpop.f32.mrb[21].mxu0 }
0x185a   :  { %1500 = vrot.lane.b32.xlu1 %v2865_v7, %s3162_s25 }
0x18cc   :  { %v1501_v10 = vpop.permute.xlu1 %1500 }
0x18cd   :  { %v1503_v11 = vmul.f32 %v2863_v57, %v1501_v10 }
0x18cf   :  { %1506 = vrot.lane.b32.xlu1 %v1503_v11, %s3163_s5 }
0x1941   :  { %v1507_v9 = vpop.permute.xlu1 %1506 }
0x1942   :  { %2582 = vmatmul.mubr.msk.f32.vlgmr.msra.gmra.mrb[22].mxu0 %vm161_vm1, %v1507_v9  ;;  %v1275_v9 = vadd.f32 %v3500_v45, %v3540_v13 }
0x1943   :  { %2740 = vmatpush3.bf16.msra.mxu0 %v3509_v58  ;;  %2603 = vmatprep.mubr.msk.f32.mxu0 %vm3160_vm0, %v3161_v1 }
0x1944   :  { %2741 = vmatprep.subr.bf16.mxu0 %v3159_v0 }
0x1947   :  { %2743 = vmatpush3.bf16.msra.mxu0 %v3513_v61 }
0x1948   :  { %2750 = vmatprep.subr.bf16.mxu0 %v3159_v0 }
0x1a15   :  { %v1576_v15 = vpop.f32.mrb[22].mxu0 }
0x1a16   :  { %v1580_v16 = vadd.f32 %v1576_v15, %v1260_v12  ;;  %v2583_v14 = vpop.f32.mrb[23].mxu0 }
0x1a18   :  { %2866 = vtanh.f32 %v1580_v16  ;;  %v2300_v19 = vmul.f32 -1.442695, %v1580_v16 }
0x1a1a   :  { %2868 = vpow2.f32 %v2300_v19 }
0x1a22   :  { %v2867_v18 = vpop.eup %2866 }
0x1a23   :  { %1590 = vrot.lane.b32.xlu0 %v2867_v18, %s3162_s25 }
0x1a24   :  { %v2869_v3 = vpop.eup %2868 }
0x1a25   :  { %v1584_v17 = vadd.f32 1.0, %v2869_v3 }
0x1a27   :  { %2870 = vrcp.f32 %v1584_v17 }
0x1a31   :  { %v2871_v5 = vpop.eup %2870 }
0x1a32   :  { %v1588_v22 = vmul.f32 %v2871_v5, %v1497_v2 }
0x1a95   :  { %v1591_v20 = vpop.permute.xlu0 %1590 }
0x1a96   :  { %v1593_v21 = vmul.f32 %v2871_v5, %v1591_v20 }
0x1a98   :  { %1595 = vrot.lane.b32.xlu1 %v1593_v21, %s3162_s25 }
0x1b0a   :  { %v1596_v23 = vpop.permute.xlu1 %1595 }
0x1b0b   :  { %v1598_v44 = vadd.f32 %v1596_v23, %v1588_v22 }
0x1b0d   :  { %2872 = vtanh.f32 %v1598_v44 }
0x1b17   :  { %v2873_v24 = vpop.eup %2872 }
0x1b18   :  { %1601 = vrot.lane.b32.xlu0 %v2873_v24, %s3162_s25  ;;  %v1280_v24 = vadd.f32 %v3540_v13, %v3573_v8 }
0x1b8a   :  { %v1602_v25 = vpop.permute.xlu0 %1601 }
0x1b8b   :  { %v1604_v26 = vmul.f32 %v2871_v5, %v1602_v25 }
0x1b8d   :  { %1607 = vrot.lane.b32.xlu1 %v1604_v26, %s3163_s5 }
0x1bff   :  { %v1608_v27 = vpop.permute.xlu1 %1607 }
0x1c00   :  { %2593 = vmatmul.mubr.msk.f32.vlgmr.msra.gmra.mrb[14].mxu1 %vm161_vm1, %v1608_v27 }
0x1c01   :  { %2746 = vmatpush3.bf16.msra.mxu1 %v3509_v58  ;;  %2614 = vmatprep.mubr.msk.f32.mxu1 %vm3160_vm0, %v3161_v1 }
0x1c02   :  { %2747 = vmatprep.subr.bf16.mxu1 %v3159_v0 }
0x1c05   :  { %2749 = vmatpush3.bf16.msra.mxu1 %v3513_v61 }
0x1c06   :  { %2756 = vmatprep.subr.bf16.mxu1 %v3159_v0 }
0x1cd3   :  { %v1677_v29 = vpop.f32.mrb[14].mxu1 }
0x1cd4   :  { %v1681_v30 = vadd.f32 %v1677_v29, %v1265_v28  ;;  %v2594_v31 = vpop.f32.mrb[15].mxu1 }
0x1cd6   :  { %2874 = vtanh.f32 %v1681_v30  ;;  %v2302_v33 = vmul.f32 -1.442695, %v1681_v30 }
0x1cd8   :  { %2876 = vpow2.f32 %v2302_v33 }
0x1ce0   :  { %v2875_v32 = vpop.eup %2874 }
0x1ce1   :  { %1691 = vrot.lane.b32.xlu0 %v2875_v32, %s3162_s25 }
0x1ce2   :  { %v2877_v34 = vpop.eup %2876 }
0x1ce3   :  { %v1685_v35 = vadd.f32 1.0, %v2877_v34 }
0x1ce5   :  { %2878 = vrcp.f32 %v1685_v35 }
0x1cef   :  { %v2879_v36 = vpop.eup %2878 }
0x1cf0   :  { %v1689_v39 = vmul.f32 %v2879_v36, %v1598_v44 }
0x1d53   :  { %v1692_v37 = vpop.permute.xlu0 %1691 }
0x1d54   :  { %v1694_v38 = vmul.f32 %v2879_v36, %v1692_v37 }
0x1d56   :  { %1696 = vrot.lane.b32.xlu1 %v1694_v38, %s3162_s25 }
0x1dc8   :  { %v1697_v43 = vpop.permute.xlu1 %1696 }
0x1dc9   :  { %v1699_v42 = vadd.f32 %v1697_v43, %v1689_v39  ;;  %v1285_v43 = vadd.f32 %v3571_v4, %v3540_v13  ;;  %v2122_v4 = vld [vmem:[%s3716_s9] sm:$0xff] }
0x1dcb   :  { %2880 = vtanh.f32 %v1699_v42 }
0x1dd5   :  { %v2881_v47 = vpop.eup %2880 }
0x1dd6   :  { %1702 = vrot.lane.b32.xlu0 %v2881_v47, %s3162_s25 }
0x1e48   :  { %v1703_v6 = vpop.permute.xlu0 %1702 }
0x1e49   :  { %v1705_v48 = vmul.f32 %v2879_v36, %v1703_v6 }
0x1e4b   :  { %1708 = vrot.lane.b32.xlu1 %v1705_v48, %s3163_s5 }
0x1ebd   :  { %v1709_v49 = vpop.permute.xlu1 %1708 }
0x1ebe   :  { %2604 = vmatmul.mubr.msk.f32.vlgmr.msra.gmra.mrb[24].mxu0 %vm161_vm1, %v1709_v49 }
0x1ebf   :  { %2752 = vmatpush3.bf16.msra.mxu0 %v3509_v58  ;;  %2625 = vmatprep.mubr.msk.f32.mxu0 %vm3160_vm0, %v3161_v1 }
0x1ec0   :  { %2753 = vmatprep.subr.bf16.mxu0 %v3159_v0 }
0x1ec3   :  { %2755 = vmatpush3.bf16.msra.mxu0 %v3513_v61 }
0x1ec4   :  { %2762 = vmatprep.subr.bf16.mxu0 %v3159_v0 }
0x1f91   :  { %v1778_v51 = vpop.f32.mrb[24].mxu0 }
0x1f92   :  { %v1782_v52 = vadd.f32 %v1778_v51, %v1270_v50  ;;  %v2605_v53 = vpop.f32.mrb[25].mxu0 }
0x1f94   :  { %2882 = vtanh.f32 %v1782_v52  ;;  %v2304_v55 = vmul.f32 -1.442695, %v1782_v52 }
0x1f96   :  { %2884 = vpow2.f32 %v2304_v55 }
0x1f9e   :  { %v2883_v54 = vpop.eup %2882 }
0x1f9f   :  { %1792 = vrot.lane.b32.xlu0 %v2883_v54, %s3162_s25 }
0x1fa0   :  { %v2885_v40 = vpop.eup %2884 }
0x1fa1   :  { %v1786_v56 = vadd.f32 1.0, %v2885_v40 }
0x1fa3   :  { %2886 = vrcp.f32 %v1786_v56  ;;  %v2123_v56 = vld [vmem:[%s3716_s9 + $0x8] sm:$0xff] }
0x1fad   :  { %v2887_v57 = vpop.eup %2886 }
0x1fae   :  { %v1790_v62 = vmul.f32 %v2887_v57, %v1699_v42 }
0x2011   :  { %v1793_v59 = vpop.permute.xlu0 %1792 }
0x2012   :  { %v1795_v60 = vmul.f32 %v2887_v57, %v1793_v59  ;;  %v2763_v59 = vpack.c.bf16 %v2123_v56, %v2122_v4 }
0x2014   :  { %1797 = vrot.lane.b32.xlu1 %v1795_v60, %s3162_s25  ;;  %v2125_v60 = vld [vmem:[%s3716_s9 + $0x18] sm:$0xff] }
0x2086   :  { %v1798_v63 = vpop.permute.xlu1 %1797 }
0x2087   :  { %v1800_v46 = vadd.f32 %v1798_v63, %v1790_v62 }
0x2089   :  { %2888 = vtanh.f32 %v1800_v46 }
0x2093   :  { %v2889_v2 = vpop.eup %2888 }
0x2094   :  { %1803 = vrot.lane.b32.xlu0 %v2889_v2, %s3162_s25 }
0x2106   :  { %v1804_v7 = vpop.permute.xlu0 %1803 }
0x2107   :  { %v1806_v10 = vmul.f32 %v2887_v57, %v1804_v7  ;;  %v2124_v57 = vld [vmem:[%s3716_s9 + $0x10] sm:$0xff]  ;;  %s3165_s9 = smov [#allocation17]  }
0x2108   :  { %v2766_v62 = vpack.c.bf16 %v2125_v60, %v2124_v57  ;;  %s2227_s1 = sshll.u32 %s3165_s9, 4  ;;  %s2228_s1 = int_to_ptr.vmem [resolvable:$true] %s2227_s1 }
0x2109   :  { %1809 = vrot.lane.b32.xlu1 %v1806_v10, %s3163_s5  ;;  %s3072_s26 = scalar_lea.vmem %s2228_s1, 256  ;;  %p3077_p1 = scmp.lt.s32.totalorder %s2228_s1, %s2228_s1 }
0x210a   :  { %p3073_p0 = scmp.ne.s32.totalorder %s2228_s1, %s3072_s26  ;;  %p3078_p2 = scmp.lt.s32.totalorder %s3072_s26, %s3072_s26 }
0x210c   :  { %p3079_p3 = por %p3078_p2, %p3077_p1 }
0x210e   :  { %p3080_p4 = pnand %p3079_p3, %p3073_p0 }
0x217b   :  { %v1810_v11 = vpop.permute.xlu1 %1809 }
0x217c   :  { %2615 = vmatmul.mubr.msk.f32.vlgmr.msra.gmra.mrb[16].mxu1 %vm161_vm1, %v1810_v11 }
0x217d   :  { %2758 = vmatpush3.bf16.msra.mxu1 %v3509_v58  ;;  %2636 = vmatprep.mubr.msk.f32.mxu1 %vm3160_vm0, %v3161_v1 }
0x217e   :  { %2759 = vmatprep.subr.bf16.mxu1 %v3159_v0 }
0x2181   :  { %2761 = vmatpush3.bf16.msra.mxu1 %v3513_v61 }
0x224f   :  { %v1879_v12 = vpop.f32.mrb[16].mxu1 }
0x2250   :  { %v1883_v15 = vadd.f32 %v1879_v12, %v1275_v9  ;;  %v2616_v16 = vpop.f32.mrb[17].mxu1 }
0x2252   :  { %2890 = vtanh.f32 %v1883_v15  ;;  %v2306_v18 = vmul.f32 -1.442695, %v1883_v15 }
0x2254   :  { %2892 = vpow2.f32 %v2306_v18 }
0x225c   :  { %v2891_v14 = vpop.eup %2890 }
0x225d   :  { %1893 = vrot.lane.b32.xlu0 %v2891_v14, %s3162_s25 }
0x225e   :  { %v2893_v58 = vpop.eup %2892 }
0x225f   :  { %v1887_v19 = vadd.f32 1.0, %v2893_v58 }
0x2261   :  { %2894 = vrcp.f32 %v1887_v19 }
0x226b   :  { %v2895_v3 = vpop.eup %2894 }
0x226c   :  { %v1891_v61 = vmul.f32 %v2895_v3, %v1800_v46 }
0x22cf   :  { %v1894_v17 = vpop.permute.xlu0 %1893 }
0x22d0   :  { %v1896_v5 = vmul.f32 %v2895_v3, %v1894_v17 }
0x22d2   :  { %1898 = vrot.lane.b32.xlu1 %v1896_v5, %s3162_s25 }
0x2344   :  { %v1899_v20 = vpop.permute.xlu1 %1898 }
0x2345   :  { %v1901_v45 = vadd.f32 %v1899_v20, %v1891_v61 }
0x2347   :  { %2896 = vtanh.f32 %v1901_v45 }
0x2351   :  { %v2897_v21 = vpop.eup %2896 }
0x2352   :  { %1904 = vrot.lane.b32.xlu0 %v2897_v21, %s3162_s25 }
0x23c4   :  { %v1905_v22 = vpop.permute.xlu0 %1904 }
0x23c5   :  { %v1907_v23 = vmul.f32 %v2895_v3, %v1905_v22 }
0x23c7   :  { %1910 = vrot.lane.b32.xlu1 %v1907_v23, %s3163_s5 }
0x2439   :  { %v1911_v44 = vpop.permute.xlu1 %1910 }
0x243a   :  { %2626 = vmatmul.mubr.msk.f32.vlgmr.msra.gmra.mrb[26].mxu0 %vm161_vm1, %v1911_v44 }
0x243b   :  { %2647 = vmatprep.mubr.msk.f32.mxu0 %vm3160_vm0, %v3161_v1  ;;  %2764 = vmatpush3.bf16.msra.mxu0 %v2763_v59 }
0x243c   :  { %2765 = vmatprep.subr.bf16.mxu0 %v3159_v0 }
0x243f   :  { %2767 = vmatpush3.bf16.msra.mxu0 %v2766_v62 }
0x250d   :  { %v1980_v25 = vpop.f32.mrb[26].mxu0 }
0x250e   :  { %v1984_v26 = vadd.f32 %v1980_v25, %v1280_v24  ;;  %v2627_v27 = vpop.f32.mrb[27].mxu0 }
0x2510   :  { %2898 = vtanh.f32 %v1984_v26  ;;  %v2308_v29 = vmul.f32 -1.442695, %v1984_v26 }
0x2512   :  { %2900 = vpow2.f32 %v2308_v29 }
0x251a   :  { %v2899_v28 = vpop.eup %2898 }
0x251b   :  { %1994 = vrot.lane.b32.xlu0 %v2899_v28, %s3162_s25 }
0x251c   :  { %v2901_v30 = vpop.eup %2900 }
0x251d   :  { %v1988_v31 = vadd.f32 1.0, %v2901_v30 }
0x251f   :  { %2902 = vrcp.f32 %v1988_v31 }
0x2529   :  { %v2903_v32 = vpop.eup %2902 }
0x252a   :  { %v1992_v1 = vmul.f32 %v2903_v32, %v1901_v45 }
0x258d   :  { %v1995_v33 = vpop.permute.xlu0 %1994 }
0x258e   :  { %v1997_v34 = vmul.f32 %v2903_v32, %v1995_v33 }
0x2590   :  { %1999 = vrot.lane.b32.xlu1 %v1997_v34, %s3162_s25 }
0x2602   :  { %v2000_v35 = vpop.permute.xlu1 %1999 }
0x2603   :  { %v2002_v8 = vadd.f32 %v2000_v35, %v1992_v1 }
0x2605   :  { %2904 = vtanh.f32 %v2002_v8 }
0x260f   :  { %v2905_v36 = vpop.eup %2904 }
0x2610   :  { %2005 = vrot.lane.b32.xlu0 %v2905_v36, %s3162_s25 }
0x2682   :  { %v2006_v37 = vpop.permute.xlu0 %2005 }
0x2683   :  { %v2008_v38 = vmul.f32 %v2903_v32, %v2006_v37 }
0x2685   :  { %2011 = vrot.lane.b32.xlu1 %v2008_v38, %s3163_s5 }
0x26f7   :  { %v2012_v39 = vpop.permute.xlu1 %2011 }
0x26f8   :  { %2637 = vmatmul.mubr.msk.f32.vlgmr.msra.gmra.mrb[18].mxu1 %vm161_vm1, %v2012_v39 }
0x27cb   :  { %v2081_v42 = vpop.f32.mrb[18].mxu1 }
0x27cc   :  { %v2085_v47 = vadd.f32 %v2081_v42, %v1285_v43  ;;  %v2638_v6 = vpop.f32.mrb[19].mxu1 }
0x27ce   :  { %2906 = vtanh.f32 %v2085_v47  ;;  %v2310_v49 = vmul.f32 -1.442695, %v2085_v47 }
0x27d0   :  { %2908 = vpow2.f32 %v2310_v49 }
0x27d8   :  { %v2907_v48 = vpop.eup %2906 }
0x27d9   :  { %2095 = vrot.lane.b32.xlu0 %v2907_v48, %s3162_s25 }
0x27da   :  { %v2909_v50 = vpop.eup %2908 }
0x27db   :  { %v2089_v51 = vadd.f32 1.0, %v2909_v50 }
0x27dd   :  { %2910 = vrcp.f32 %v2089_v51 }
0x27e7   :  { %v2911_v52 = vpop.eup %2910 }
0x27e8   :  { %v2093_v55 = vmul.f32 %v2911_v52, %v2002_v8 }
0x284b   :  { %v2096_v53 = vpop.permute.xlu0 %2095 }
0x284c   :  { %v2098_v54 = vmul.f32 %v2911_v52, %v2096_v53 }
0x284e   :  { %2100 = vrot.lane.b32.xlu1 %v2098_v54, %s3162_s25 }
0x28c0   :  { %v2101_v40 = vpop.permute.xlu1 %2100 }
0x28c1   :  { %v2103_v13 = vadd.f32 %v2101_v40, %v2093_v55 }
0x28c3   :  { %2912 = vtanh.f32 %v2103_v13 }
0x28cd   :  { %v2913_v63 = vpop.eup %2912 }
0x28ce   :  { %2106 = vrot.lane.b32.xlu0 %v2913_v63, %s3162_s25 }
0x28d2   :  { %1132 = vrot.lane.b32.xlu0 %v3555_v41, %s3164_s16 }
0x2940   :  { %v2107_v46 = vpop.permute.xlu0 %2106 }
0x2941   :  { %v2109_v2 = vmul.f32 %v2911_v52, %v2107_v46 }
0x2943   :  { %2111 = vrot.lane.b32.xlu1 %v2109_v2, %s3163_s5 }
0x2944   :  { %v1133_v7 = vpop.permute.xlu0 %1132 }
0x2945   :  { %1135 = vst.msk [vmem:[#allocation19] sm:$0xff] %vm161_vm1, %v1133_v7 }
0x2947   :  { %2117 = vrot.lane.b32.xlu1 %v2103_v13, %s3164_s16 }
0x29b5   :  { %v2112_v10 = vpop.permute.xlu1 %2111 }
0x29b6   :  { %2115 = vst.msk [vmem:[#allocation17 + $0x8] sm:$0xff] %vm161_vm1, %v2112_v10  ;;  %2648 = vmatmul.mubr.msk.f32.vlgmr.msra.gmra.mrb[28].mxu0 %vm161_vm1, %v2112_v10 }
0x29b9   :  { %v2118_v0 = vpop.permute.xlu1 %2117 }
0x29ba   :  { %2121 = vst.msk [vmem:[#allocation19 + $0x8] sm:$0xff] %vm161_vm1, %v2118_v0 }
0x29bb   :  { %3083 = shalt.err (!%p3080_p4)
}
0x29bc   :  { %s3084_s22 = scalar_lea.hbm %s3719_s12, 256 }
0x29bd   :  { %p3085_p5 = scmp.ne.s32.totalorder %s3719_s12, %s3084_s22  ;;  %p3088_p6 = scmp.lt.u32.totalorder %s3084_s22, %s3719_s12 }
0x29bf   :  { %p3090_p7 = pnand %p3088_p6, %p3085_p5 }
0x29c1   :  { %3093 = shalt.err (!%p3090_p7)
}
0x29c2   :  { %2233 = dma.vmem_to_hbm [thread:$0]  %s2228_s1, 256, %s3719_s12, [#allocation18], %s3152_s20, %s3152_s20, %s3153_s21  }
0x29c3   :  { %s3166_s25 = smov [#allocation19]  }
0x29c4   :  { %s2239_s5 = sshll.u32 %s3166_s25, 4  ;;  %s2240_s5 = int_to_ptr.vmem [resolvable:$true] %s2239_s5 }
0x29c5   :  { %s3094_s6 = scalar_lea.vmem %s2240_s5, 256  ;;  %p3099_p9 = scmp.lt.s32.totalorder %s2240_s5, %s2240_s5 }
0x29c6   :  { %p3095_p8 = scmp.ne.s32.totalorder %s2240_s5, %s3094_s6  ;;  %p3100_p10 = scmp.lt.s32.totalorder %s3094_s6, %s3094_s6 }
0x29c8   :  { %p3101_p11 = por %p3100_p10, %p3099_p9 }
0x29ca   :  { %p3102_p12 = pnand %p3101_p11, %p3095_p8 }
0x29cc   :  { %3105 = shalt.err (!%p3102_p12)
}
0x29cd   :  { %s3106_s27 = scalar_lea.hbm %s3720_s13, 256 }
0x29ce   :  { %p3107_p13 = scmp.ne.s32.totalorder %s3720_s13, %s3106_s27  ;;  %p3110_p0 = scmp.lt.u32.totalorder %s3106_s27, %s3720_s13 }
0x29d0   :  { %p3112_p1 = pnand %p3110_p0, %p3107_p13 }
0x29d2   :  { %3115 = shalt.err (!%p3112_p1)
}
0x29d3   :  { %2245 = dma.vmem_to_hbm [thread:$0]  %s2240_s5, 256, %s3720_s13, [#allocation18], %s3152_s20, %s3152_s20, %s3153_s21  }
0x29d4   :  { %v2311_v41 = vld [vmem:[%s3717_s10] ss:$0 sm:$0xff]  ;;  %s3167_s9 = smov [#allocation16]  }
0x29d5   :  { %s2218_s1 = sshll.u32 %s3167_s9, 4  ;;  %s2219_s1 = int_to_ptr.vmem [resolvable:$true] %s2218_s1 }
0x29d6   :  { %s3116_s26 = scalar_lea.vmem %s2219_s1, 128  ;;  %p3121_p3 = scmp.lt.s32.totalorder %s2219_s1, %s2219_s1 }
0x29d7   :  { %p3117_p2 = scmp.ne.s32.totalorder %s2219_s1, %s3116_s26  ;;  %p3122_p4 = scmp.lt.s32.totalorder %s3116_s26, %s3116_s26 }
0x29d9   :  { %p3123_p5 = por %p3122_p4, %p3121_p3 }
0x29db   :  { %p3124_p6 = pnand %p3123_p5, %p3117_p2 }
0x2a89   :  { %v2201_v11 = vpop.f32.mrb[28].mxu0 }
0x2a8a   :  { %v2202_v9 = vadd.f32 %v2311_v41, %v2201_v11  ;;  %v2649_v12 = vpop.f32.mrb[29].mxu0 }
0x2a8c   :  { %v2313_v15 = vmul.f32 -1.442695, %v2202_v9 }
0x2a8e   :  { %2914 = vpow2.f32 %v2313_v15 }
0x2a98   :  { %v2915_v16 = vpop.eup %2914 }
0x2a99   :  { %v2208_v14 = vadd.f32 1.0, %v2915_v16 }
0x2a9b   :  { %2916 = vrcp.f32 %v2208_v14 }
0x2aa5   :  { %v2917_v18 = vpop.eup %2916 }
0x2aa6   :  { %2211 = vst [vmem:[#allocation16] sm:$0xff] %v2917_v18 }
0x2aa7   :  { %3127 = shalt.err (!%p3124_p6)
}
0x2aa8   :  { %s3128_s20 = scalar_lea.hbm %s3718_s11, 128 }
0x2aa9   :  { %p3129_p7 = scmp.ne.s32.totalorder %s3718_s11, %s3128_s20  ;;  %p3132_p8 = scmp.lt.u32.totalorder %s3128_s20, %s3718_s11 }
0x2aab   :  { %p3134_p9 = pnand %p3132_p8, %p3129_p7 }
0x2aad   :  { %3137 = shalt.err (!%p3134_p9)
}
0x2aae   :  { %2221 = dma.vmem_to_hbm [thread:$0]  %s2219_s1, 128, %s3718_s11, [#allocation6]  }
0x2aaf   :  { %3146 = dma.done.wait [#allocation6], 128  }
0x2ab0   :  { %3147 = vsyncadd [#allocation6], 4294967168 }
0x2ab1   :  { %3148 = dma.done.wait [#allocation18], 512  }
0x2ab2   :  { %3149 = vsyncadd [#allocation18], 4294966784 }
0x2ab3   :  { %2255 = vsyncpa [#allocation5], 1 }
0x2ab4   :  { %2256 = vsyncpa [#allocation8], 1 }
0x2ab5   :  { %2257 = vsyncpa [#allocation11], 1 }
0x2ab6   :  { %2258 = vsyncpa [#allocation14], 1 }
0x2ab7   :  { %2259 = vsyncpa [#allocation6], 1 }
0x2ab8   :  { %2260 = vsyncpa [#allocation18], 1 }

</bundles_post_ra>
